<compile_context>
chip_gen: v7x
topology: tpu7x:2x2x1
jax: 0.10.0
libtpu: 0.0.40
codegen_flags: <defaults>
</compile_context>

<pallas_src>
import functools

import jax
import jax.numpy as jnp
from jax.experimental import pallas as pl
from jax.experimental.pallas import tpu as pltpu


def _ceil_to(x, m):
    return (x + m - 1) // m * m


@functools.lru_cache(maxsize=None)
def _vmem_limit_bytes():
    """Per-generation VMEM budget with headroom (v7x: 64 MiB phys -> ~48 MiB,
    v5e/v6e: 128 MiB phys -> ~96 MiB)."""
    cap = 128 * 1024 * 1024
    try:
        info = pltpu.get_tpu_info()
        cap = int(getattr(info, "vmem_capacity_bytes", cap))
    except Exception:
        pass
    return min((cap * 3) // 4, 100 * 1024 * 1024)


def _big_vmem():
    return _vmem_limit_bytes() > 64 * 1024 * 1024


# ----------------------------- Pallas kernels ------------------------------

def _ln_rows(x_ref, g_ref, b_ref):
    # LayerNorm over the last dim, f32 math, PyTorch defaults (biased var, eps=1e-5).
    x = x_ref[...].astype(jnp.float32)
    mean = jnp.mean(x, axis=-1, keepdims=True)
    var = jnp.mean(jnp.square(x - mean), axis=-1, keepdims=True)
    h = (x - mean) * jax.lax.rsqrt(var + 1e-5)
    return h * g_ref[...] + b_ref[...]


def _gelu_tanh(x):
    # tanh-approximate GELU (EUP tanh).  TODO(synk): exact erf variant.
    c = 0.7978845608028654  # sqrt(2/pi)
    return 0.5 * x * (1.0 + jnp.tanh(c * (x + 0.044715 * x * x * x)))


def _ln_matmul_kernel(x_ref, g_ref, b_ref, w_ref, o_ref, h_sc):
    # fused LayerNorm -> matmul (no bias).  LN computed once per row tile
    # (j == 0) and cached in VMEM scratch for all N tiles.
    @pl.when(pl.program_id(1) == 0)
    def _():
        h_sc[...] = _ln_rows(x_ref, g_ref, b_ref).astype(h_sc.dtype)

    acc = jnp.dot(h_sc[...], w_ref[...], preferred_element_type=jnp.float32)
    o_ref[...] = acc.astype(o_ref.dtype)


def _ln_matmul_bias_gelu_kernel(x_ref, g_ref, b_ref, w_ref, bias_ref, o_ref, h_sc):
    # fused LayerNorm -> matmul -> +bias -> GELU (bf16 out).
    @pl.when(pl.program_id(1) == 0)
    def _():
        h_sc[...] = _ln_rows(x_ref, g_ref, b_ref).astype(h_sc.dtype)

    acc = jnp.dot(h_sc[...], w_ref[...], preferred_element_type=jnp.float32)
    acc = acc + bias_ref[...].astype(jnp.float32)
    o_ref[...] = _gelu_tanh(acc).astype(o_ref.dtype)


def _matmul_bias_resid_kernel(h_ref, w_ref, bias_ref, r_ref, o_ref, acc_ref):
    # K-tiled matmul with f32 VMEM accumulator; epilogue fuses +bias and +residual.
    k = pl.program_id(2)

    @pl.when(k == 0)
    def _init():
        acc_ref[...] = jnp.zeros_like(acc_ref)

    acc_ref[...] += jnp.dot(h_ref[...], w_ref[...],
                            preferred_element_type=jnp.float32)

    @pl.when(k == pl.num_programs(2) - 1)
    def _finalize():
        o_ref[...] = (acc_ref[...]
                      + bias_ref[...].astype(jnp.float32)
                      + r_ref[...].astype(jnp.float32)).astype(o_ref.dtype)


def _flash_attn_kernel(q_ref, k_ref, v_ref, o_ref, m_sc, l_sc, acc_sc, *,
                       scale, is_causal, tq, tk, seq_len, needs_valid_mask):
    # grid = (B, H, n_q, n_k), n_k innermost ("arbitrary").
    qi = pl.program_id(2)
    ki = pl.program_id(3)

    @pl.when(ki == 0)
    def _init():
        m_sc[...] = jnp.full_like(m_sc, -1e30)
        l_sc[...] = jnp.zeros_like(l_sc)
        acc_sc[...] = jnp.zeros_like(acc_sc)

    def _compute():
        q = q_ref[0, 0]                                   # (tq, d) bf16
        k = k_ref[0, 0]                                   # (tk, d) bf16
        s = jax.lax.dot_general(q, k, (((1,), (1,)), ((), ())),
                                preferred_element_type=jnp.float32) * scale
        mask = None
        if is_causal or needs_valid_mask:
            row = qi * tq + jax.lax.broadcasted_iota(jnp.int32, (tq, tk), 0)
            col = ki * tk + jax.lax.broadcasted_iota(jnp.int32, (tq, tk), 1)
            if is_causal:
                mask = col <= row
            if needs_valid_mask:
                vm = col < seq_len
                mask = vm if mask is None else jnp.logical_and(mask, vm)
            s = jnp.where(mask, s, -1e30)

        m_prev = m_sc[...]
        m_new = jnp.maximum(m_prev, jnp.max(s, axis=-1, keepdims=True))
        alpha = jnp.exp(m_prev - m_new)
        p = jnp.exp(s - m_new)
        if mask is not None:
            p = jnp.where(mask, p, 0.0)                   # robust if a row is fully masked
        l_sc[...] = alpha * l_sc[...] + jnp.sum(p, axis=-1, keepdims=True)
        acc_sc[...] = alpha * acc_sc[...] + jax.lax.dot_general(
            p.astype(v_ref.dtype), v_ref[0, 0], (((1,), (0,)), ((), ())),
            preferred_element_type=jnp.float32)
        m_sc[...] = m_new

    if is_causal:
        # causal tile skipping: KV tile entirely above the diagonal -> skip.
        pl.when(ki * tk <= qi * tq + (tq - 1))(_compute)
    else:
        _compute()

    @pl.when(ki == pl.num_programs(3) - 1)
    def _finalize():
        l = l_sc[...]
        l = jnp.where(l <= 0.0, 1.0, l)                   # padded / fully-masked rows
        o_ref[0, 0] = (acc_sc[...] / l).astype(o_ref.dtype)


# ------------------------------ wrappers ------------------------------------

def ln_linear(x2d, gamma, beta, w, b=None, *, out_dtype=jnp.bfloat16,
              fuse_gelu=False, tm_pref=None, tn_pref=None):
    """out = (GELU?)(LayerNorm(x2d) @ w (+ b)).  x2d:(M,D) f32, w:(D,N) bf16."""
    M, D = x2d.shape
    Dw, N = w.shape
    assert Dw == D
    if tm_pref is None:
        tm_pref = 512 if _big_vmem() else 256
    if tn_pref is None:
        tn_pref = 1024 if _big_vmem() else 512
    tm = min(tm_pref, _ceil_to(M, 16))
    Mp = _ceil_to(M, tm)
    tn = N if N <= tn_pref else tn_pref                    # tn_pref multiple of 128
    Np = _ceil_to(N, tn)

    xp = x2d if Mp == M else jnp.pad(x2d, ((0, Mp - M), (0, 0)))
    wp = w if Np == N else jnp.pad(w, ((0, 0), (0, Np - N)))
    g2 = gamma.reshape(1, D).astype(jnp.float32)
    b2 = beta.reshape(1, D).astype(jnp.float32)

    in_specs = [
        pl.BlockSpec((tm, D), lambda i, j: (i, 0)),
        pl.BlockSpec((1, D), lambda i, j: (0, 0)),
        pl.BlockSpec((1, D), lambda i, j: (0, 0)),
        pl.BlockSpec((D, tn), lambda i, j: (0, j)),
    ]
    args = [xp, g2, b2, wp]
    if b is not None:
        bp = b if Np == N else jnp.pad(b, (0, Np - N))
        in_specs.append(pl.BlockSpec((1, tn), lambda i, j: (0, j)))
        args.append(bp.reshape(1, Np).astype(jnp.float32))
        kernel = _ln_matmul_bias_gelu_kernel if fuse_gelu else None
        assert kernel is not None, "bias path is only used with fused GELU here"
    else:
        assert not fuse_gelu
        kernel = _ln_matmul_kernel

    n_i = Mp // tm
    out_itemsize = jnp.dtype(out_dtype).itemsize
    cost = pl.CostEstimate(
        flops=2 * Mp * D * Np,
        transcendentals=(Mp * Np if fuse_gelu else 0),
        bytes_accessed=4 * Mp * D + n_i * 2 * D * Np + out_itemsize * Mp * Np,
    )
    out = pl.pallas_call(
        kernel,
        out_shape=jax.ShapeDtypeStruct((Mp, Np), out_dtype),
        grid=(n_i, Np // tn),
        in_specs=in_specs,
        out_specs=pl.BlockSpec((tm, tn), lambda i, j: (i, j)),
        scratch_shapes=[pltpu.VMEM((tm, D), jnp.bfloat16)],   # cached LN(x) row tile
        compiler_params=pltpu.CompilerParams(
            dimension_semantics=("parallel", "arbitrary"),
            vmem_limit_bytes=_vmem_limit_bytes()),
        cost_estimate=cost,
    )(*args)
    if Mp != M or Np != N:
        out = out[:M, :N]
    return out


def linear_bias_residual(h, w, b, resid, *, out_dtype=jnp.float32,
                         tm_pref=None, tn_pref=None, tk_pref=1024):
    """out = h @ w + b + resid, K-tiled with f32 accumulator.  h:(M,K) bf16, w:(K,N) bf16."""
    M, K = h.shape
    Kw, N = w.shape
    assert Kw == K and resid.shape == (M, N)
    if tm_pref is None:
        tm_pref = 512 if _big_vmem() else 256
    if tn_pref is None:
        tn_pref = 1024 if _big_vmem() else 512
    tm = min(tm_pref, _ceil_to(M, 16))
    Mp = _ceil_to(M, tm)
    tn = N if N <= tn_pref else tn_pref
    Np = _ceil_to(N, tn)
    tk = K if K <= tk_pref else tk_pref
    Kp = _ceil_to(K, tk)

    hp = h if (Mp == M and Kp == K) else jnp.pad(h, ((0, Mp - M), (0, Kp - K)))
    wp = w if (Kp == K and Np == N) else jnp.pad(w, ((0, Kp - K), (0, Np - N)))
    rp = resid if (Mp == M and Np == N) else jnp.pad(resid, ((0, Mp - M), (0, Np - N)))
    bp = b if Np == N else jnp.pad(b, (0, Np - N))

    cost = pl.CostEstimate(
        flops=2 * Mp * Kp * Np,
        transcendentals=0,
        bytes_accessed=(Np // tn) * 2 * Mp * Kp + (Mp // tm) * 2 * Kp * Np
                       + 8 * Mp * Np,
    )
    out = pl.pallas_call(
        _matmul_bias_resid_kernel,
        out_shape=jax.ShapeDtypeStruct((Mp, Np), out_dtype),
        grid=(Mp // tm, Np // tn, Kp // tk),
        in_specs=[
            pl.BlockSpec((tm, tk), lambda i, j, k: (i, k)),
            pl.BlockSpec((tk, tn), lambda i, j, k: (k, j)),
            pl.BlockSpec((1, tn), lambda i, j, k: (0, j)),
            pl.BlockSpec((tm, tn), lambda i, j, k: (i, j)),
        ],
        out_specs=pl.BlockSpec((tm, tn), lambda i, j, k: (i, j)),
        scratch_shapes=[pltpu.VMEM((tm, tn), jnp.float32)],
        compiler_params=pltpu.CompilerParams(
            dimension_semantics=("parallel", "parallel", "arbitrary"),
            vmem_limit_bytes=_vmem_limit_bytes()),
        cost_estimate=cost,
    )(hp.astype(jnp.bfloat16), wp,
      bp.reshape(1, Np).astype(jnp.float32), rp.astype(jnp.float32))
    if Mp != M or Np != N:
        out = out[:M, :N]
    return out


def flash_mha(q, k, v, *, is_causal=True):
    """q, k, v: (B, H, S, d) bf16 -> (B, H, S, d) bf16; flash-style online softmax."""
    B, H, S, d = q.shape
    scale = 1.0 / (d ** 0.5)
    t_pref = 256 if _big_vmem() else 128
    t = min(t_pref, _ceil_to(S, 8))
    Sp = _ceil_to(S, t)
    if Sp != S:
        pad = ((0, 0), (0, 0), (0, Sp - S), (0, 0))
        q, k, v = jnp.pad(q, pad), jnp.pad(k, pad), jnp.pad(v, pad)
    n_q = Sp // t
    n_k = Sp // t

    kern = functools.partial(_flash_attn_kernel, scale=scale, is_causal=is_causal,
                             tq=t, tk=t, seq_len=S, needs_valid_mask=(Sp != S))
    cost = pl.CostEstimate(
        flops=4 * B * H * Sp * Sp * d,
        transcendentals=B * H * Sp * Sp,
        bytes_accessed=(3 * 2 + 2) * B * H * Sp * d,
    )
    out = pl.pallas_call(
        kern,
        out_shape=jax.ShapeDtypeStruct((B, H, Sp, d), jnp.bfloat16),
        grid=(B, H, n_q, n_k),
        in_specs=[
            pl.BlockSpec((1, 1, t, d), lambda b, h, qi, ki: (b, h, qi, 0)),
            pl.BlockSpec((1, 1, t, d), lambda b, h, qi, ki: (b, h, ki, 0)),
            pl.BlockSpec((1, 1, t, d), lambda b, h, qi, ki: (b, h, ki, 0)),
        ],
        out_specs=pl.BlockSpec((1, 1, t, d), lambda b, h, qi, ki: (b, h, qi, 0)),
        scratch_shapes=[pltpu.VMEM((t, 1), jnp.float32),   # running max m
                        pltpu.VMEM((t, 1), jnp.float32),   # running denom l
                        pltpu.VMEM((t, d), jnp.float32)],  # output accumulator
        compiler_params=pltpu.CompilerParams(
            dimension_semantics=("parallel", "parallel", "parallel", "arbitrary"),
            vmem_limit_bytes=_vmem_limit_bytes()),
        cost_estimate=cost,
    )(q.astype(jnp.bfloat16), k.astype(jnp.bfloat16), v.astype(jnp.bfloat16))
    if Sp != S:
        out = out[:, :, :S, :]
    return out


# ----------------------------- model (glue) ---------------------------------

def split_heads(x, n_heads):
    # einops 'bs n (d h) -> bs h n d'  (head index is the INNER factor)
    B, S, D = x.shape
    d = D // n_heads
    return x.reshape(B, S, d, n_heads).transpose(0, 3, 1, 2)      # (B, H, S, d)


def merge_heads(x):
    # einops 'bs h n d -> bs n (d h)'
    B, h, S, d = x.shape
    return x.transpose(0, 2, 3, 1).reshape(B, S, d * h)


def encoder_block_forward(params, x, *, is_causal=True):
    """x: (B, S, D) f32.  Pre-LN block: x + attn(LN1 x); then x + MLP(LN2 x)."""
    B, S, D = x.shape
    n_heads = D // 64
    M = B * S

    # --- attention sublayer: LN1 fused into the (bias-free) QKV projection ---
    x2 = x.reshape(M, D)
    qkv = ln_linear(x2, params["ln1_g"], params["ln1_b"], params["w_qkv"],
                    None, out_dtype=jnp.bfloat16)                 # (M, 3D) bf16
    q, k, v = jnp.split(qkv.reshape(B, S, 3 * D), 3, axis=2)
    # TODO(synk): drop these XLA transposes by reading q/k/v directly from the
    #             (M, 3D) qkv buffer in the attention kernel (head-major layout).
    qh, kh, vh = (split_heads(t, n_heads) for t in (q, k, v))     # (B, H, S, d)
    attn = flash_mha(qh, kh, vh, is_causal=is_causal)             # (B, H, S, d) bf16
    x = merge_heads(attn).astype(jnp.float32) + x                 # residual (f32)

    # --- MLP sublayer: LN2 + bias + GELU fused into fc1; bias+residual fused into fc2 ---
    x2 = x.reshape(M, D)
    h1 = ln_linear(x2, params["ln2_g"], params["ln2_b"],
                   params["w_fc1"], params["b_fc1"],
                   out_dtype=jnp.bfloat16, fuse_gelu=True)        # (M, 4D) bf16
    out = linear_bias_residual(h1, params["w_fc2"], params["b_fc2"], x2)  # (M, D) f32
    # dropout_level = 0 -> Dropout is an identity (eval semantics)
    return out.reshape(B, S, D)


# ------------------------- deterministic params -----------------------------

def init_params(key, *, embed_dim, mlp_multiplier=4):
    # Weights are stored bf16 once here (cast hoisted out of the jitted forward).
    D, Hid = embed_dim, mlp_multiplier * embed_dim
    k1, k2, k3 = jax.random.split(key, 3)
    nrm = lambda k, shp: (0.02 * jax.random.normal(k, shp, dtype=jnp.float32))
    return {
        "ln1_g": jnp.ones((D,), jnp.float32),
        "ln1_b": jnp.zeros((D,), jnp.float32),
        "w_qkv": nrm(k1, (D, 3 * D)).astype(jnp.bfloat16),   # qkv_linear: bias=False
        "ln2_g": jnp.ones((D,), jnp.float32),
        "ln2_b": jnp.zeros((D,), jnp.float32),
        "w_fc1": nrm(k2, (D, Hid)).astype(jnp.bfloat16),
        "b_fc1": jnp.zeros((Hid,), jnp.float32),
        "w_fc2": nrm(k3, (Hid, D)).astype(jnp.bfloat16),
        "b_fc2": jnp.zeros((D,), jnp.float32),
    }


# --------------------------------- main --------------------------------------

if __name__ == "__main__":
    B, S = 2, 16
    embed_dim = 128            # n_heads = embed_dim // 64 = 2, head_dim = 64
    mlp_multiplier = 4
    # dropout_level = 0 -> dropout layers are identities

    key = jax.random.PRNGKey(0)
    pkey, xkey = jax.random.split(key)
    params = init_params(pkey, embed_dim=embed_dim, mlp_multiplier=mlp_multiplier)
    x = jax.random.normal(xkey, (B, S, embed_dim), dtype=jnp.float32)

    fwd = jax.jit(functools.partial(encoder_block_forward, is_causal=True))
    y = fwd(params, x)
    jax.block_until_ready(y)

    assert y.shape == (B, S, embed_dim)
    assert bool(jnp.all(jnp.isfinite(y)))
    print("KERNEL_OK")
</pallas_src>

<mosaic_0001>
module attributes {stable_mosaic.version = 11 : i64} {
  func.func @_ln_matmul_kernel(%arg0: i32, %arg1: i32, %arg2: memref<32x128xf32, #tpu.memory_space<vmem>>, %arg3: memref<1x128xf32, #tpu.memory_space<vmem>>, %arg4: memref<1x128xf32, #tpu.memory_space<vmem>>, %arg5: memref<128x384xbf16, #tpu.memory_space<vmem>>, %arg6: memref<32x384xbf16, #tpu.memory_space<vmem>>, %arg7: memref<32x128xbf16, #tpu.memory_space<vmem>>) attributes {dimension_semantics = [#tpu.dimension_semantics<parallel>, #tpu.dimension_semantics<arbitrary>], iteration_bounds = array<i64: 1, 1>, scalar_prefetch = 0 : i64, scratch_operands = 1 : i64, tpu.core_type = #tpu.core_type<tc>, window_params = [{transform_indices = @transform_0, window_bounds = array<i64: 32, 128>}, {pipeline_mode = #tpu.pipeline_mode<synchronous>, transform_indices = @transform_1, window_bounds = array<i64: 1, 128>}, {pipeline_mode = #tpu.pipeline_mode<synchronous>, transform_indices = @transform_2, window_bounds = array<i64: 1, 128>}, {transform_indices = @transform_3, window_bounds = array<i64: 128, 384>}, {transform_indices = @transform_4, window_bounds = array<i64: 32, 384>}]} {
    %c0_i32 = arith.constant 0 : i32
    %0 = arith.cmpi eq, %arg1, %c0_i32 : i32
    %1 = arith.extui %0 : i1 to i32
    %c0_i32_0 = arith.constant 0 : i32
    %2 = arith.cmpi ne, %1, %c0_i32_0 : i32
    scf.if %2 {
      %c0_6 = arith.constant 0 : index
      %c0_7 = arith.constant 0 : index
      %8 = vector.load %arg2[%c0_6, %c0_7] : memref<32x128xf32, #tpu.memory_space<vmem>>, vector<32x128xf32>
      %cst_8 = arith.constant dense<0.000000e+00> : vector<32xf32>
      %9 = vector.multi_reduction <add>, %8, %cst_8 [1] : vector<32x128xf32> to vector<32xf32>
      %10 = vector.shape_cast %9 : vector<32xf32> to vector<32x1xf32>
      %cst_9 = arith.constant 1.280000e+02 : f32
      %11 = vector.broadcast %cst_9 : f32 to vector<32x1xf32>
      %12 = arith.divf %10, %11 : vector<32x1xf32>
      %13 = vector.broadcast %12 : vector<32x1xf32> to vector<32x128xf32>
      %14 = arith.subf %8, %13 : vector<32x128xf32>
      %15 = arith.mulf %14, %14 : vector<32x128xf32>
      %cst_10 = arith.constant dense<0.000000e+00> : vector<32xf32>
      %16 = vector.multi_reduction <add>, %15, %cst_10 [1] : vector<32x128xf32> to vector<32xf32>
      %17 = vector.shape_cast %16 : vector<32xf32> to vector<32x1xf32>
      %cst_11 = arith.constant 1.280000e+02 : f32
      %18 = vector.broadcast %cst_11 : f32 to vector<32x1xf32>
      %19 = arith.divf %17, %18 : vector<32x1xf32>
      %20 = vector.broadcast %12 : vector<32x1xf32> to vector<32x128xf32>
      %21 = arith.subf %8, %20 : vector<32x128xf32>
      %cst_12 = arith.constant 9.99999974E-6 : f32
      %22 = vector.broadcast %cst_12 : f32 to vector<32x1xf32>
      %23 = arith.addf %19, %22 : vector<32x1xf32>
      %24 = math.rsqrt %23 : vector<32x1xf32>
      %25 = vector.broadcast %24 : vector<32x1xf32> to vector<32x128xf32>
      %26 = arith.mulf %21, %25 : vector<32x128xf32>
      %c0_13 = arith.constant 0 : index
      %c0_14 = arith.constant 0 : index
      %27 = vector.load %arg3[%c0_13, %c0_14] : memref<1x128xf32, #tpu.memory_space<vmem>>, vector<1x128xf32>
      %28 = vector.broadcast %27 : vector<1x128xf32> to vector<32x128xf32>
      %29 = arith.mulf %26, %28 : vector<32x128xf32>
      %c0_15 = arith.constant 0 : index
      %c0_16 = arith.constant 0 : index
      %30 = vector.load %arg4[%c0_15, %c0_16] : memref<1x128xf32, #tpu.memory_space<vmem>>, vector<1x128xf32>
      %31 = vector.broadcast %30 : vector<1x128xf32> to vector<32x128xf32>
      %32 = arith.addf %29, %31 : vector<32x128xf32>
      %33 = arith.truncf %32 : vector<32x128xf32> to vector<32x128xbf16>
      %c0_17 = arith.constant 0 : index
      %c0_18 = arith.constant 0 : index
      %34 = vector.load %arg7[%c0_17, %c0_18] : memref<32x128xbf16, #tpu.memory_space<vmem>>, vector<32x128xbf16>
      tpu.vector_store %arg7[%c0_17, %c0_18], %33 {strides = array<i32>} : memref<32x128xbf16, #tpu.memory_space<vmem>>, vector<32x128xbf16>,
    } else {
    }
    %c0 = arith.constant 0 : index
    %c0_1 = arith.constant 0 : index
    %3 = vector.load %arg7[%c0, %c0_1] : memref<32x128xbf16, #tpu.memory_space<vmem>>, vector<32x128xbf16>
    %c0_2 = arith.constant 0 : index
    %c0_3 = arith.constant 0 : index
    %4 = vector.load %arg5[%c0_2, %c0_3] : memref<128x384xbf16, #tpu.memory_space<vmem>>, vector<128x384xbf16>
    %cst = arith.constant dense<0.000000e+00> : vector<32x384xf32>
    %5 = tpu.matmul %3, %4, %cst {dimension_numbers = #tpu.dot_dimension_numbers<[1], [0], [0], [1], [0, 0, 1, 1], [], []>} : vector<32x128xbf16>, vector<128x384xbf16>, vector<32x384xf32> -> vector<32x384xf32>
    %6 = arith.truncf %5 : vector<32x384xf32> to vector<32x384xbf16>
    %c0_4 = arith.constant 0 : index
    %c0_5 = arith.constant 0 : index
    %7 = vector.load %arg6[%c0_4, %c0_5] : memref<32x384xbf16, #tpu.memory_space<vmem>>, vector<32x384xbf16>
    tpu.vector_store %arg6[%c0_4, %c0_5], %6 {strides = array<i32>} : memref<32x384xbf16, #tpu.memory_space<vmem>>, vector<32x384xbf16>,
    return
  }
  func.func @transform_0(%arg0: i32, %arg1: i32) -> (i32, i32) {
    %c0_i32 = arith.constant 0 : i32
    %c0_i32_0 = arith.constant 0 : i32
    return %arg0, %c0_i32 : i32, i32
  }
  func.func @transform_1(%arg0: i32, %arg1: i32) -> (i32, i32) {
    %c0_i32 = arith.constant 0 : i32
    %c0_i32_0 = arith.constant 0 : i32
    %c0_i32_1 = arith.constant 0 : i32
    return %c0_i32, %c0_i32_0 : i32, i32
  }
  func.func @transform_2(%arg0: i32, %arg1: i32) -> (i32, i32) {
    %c0_i32 = arith.constant 0 : i32
    %c0_i32_0 = arith.constant 0 : i32
    %c0_i32_1 = arith.constant 0 : i32
    return %c0_i32, %c0_i32_0 : i32, i32
  }
  func.func @transform_3(%arg0: i32, %arg1: i32) -> (i32, i32) {
    %c0_i32 = arith.constant 0 : i32
    %c0_i32_0 = arith.constant 0 : i32
    return %c0_i32, %arg1 : i32, i32
  }
  func.func @transform_4(%arg0: i32, %arg1: i32) -> (i32, i32) {
    %c0_i32 = arith.constant 0 : i32
    return %arg0, %arg1 : i32, i32
  }
}

module attributes {stable_mosaic.version = 11 : i64} {
  func.func @_flash_attn_kernel(%arg0: i32, %arg1: i32, %arg2: i32, %arg3: i32, %arg4: memref<1x1x16x64xbf16, #tpu.memory_space<vmem>>, %arg5: memref<1x1x16x64xbf16, #tpu.memory_space<vmem>>, %arg6: memref<1x1x16x64xbf16, #tpu.memory_space<vmem>>, %arg7: memref<1x1x16x64xbf16, #tpu.memory_space<vmem>>, %arg8: memref<16x1xf32, #tpu.memory_space<vmem>>, %arg9: memref<16x1xf32, #tpu.memory_space<vmem>>, %arg10: memref<16x64xf32, #tpu.memory_space<vmem>>) attributes {dimension_semantics = [#tpu.dimension_semantics<parallel>, #tpu.dimension_semantics<parallel>, #tpu.dimension_semantics<parallel>, #tpu.dimension_semantics<arbitrary>], iteration_bounds = array<i64: 2, 2, 1, 1>, scalar_prefetch = 0 : i64, scratch_operands = 3 : i64, tpu.core_type = #tpu.core_type<tc>, window_params = [{transform_indices = @transform_0, window_bounds = array<i64: 1, 1, 16, 64>}, {transform_indices = @transform_1, window_bounds = array<i64: 1, 1, 16, 64>}, {transform_indices = @transform_2, window_bounds = array<i64: 1, 1, 16, 64>}, {transform_indices = @transform_3, window_bounds = array<i64: 1, 1, 16, 64>}]} {
    %c0_i32 = arith.constant 0 : i32
    %0 = arith.cmpi eq, %arg3, %c0_i32 : i32
    %1 = arith.extui %0 : i1 to i32
    %c0_i32_0 = arith.constant 0 : i32
    %2 = arith.cmpi ne, %1, %c0_i32_0 : i32
    scf.if %2 {
      %cst = arith.constant -1.000000e+30 : f32
      %12 = vector.broadcast %cst : f32 to vector<16x1xf32>
      %c0 = arith.constant 0 : index
      %c0_5 = arith.constant 0 : index
      %13 = vector.load %arg8[%c0, %c0_5] : memref<16x1xf32, #tpu.memory_space<vmem>>, vector<16x1xf32>
      tpu.vector_store %arg8[%c0, %c0_5], %12 {strides = array<i32>} : memref<16x1xf32, #tpu.memory_space<vmem>>, vector<16x1xf32>,
      %cst_6 = arith.constant 0.000000e+00 : f32
      %14 = vector.broadcast %cst_6 : f32 to vector<16x1xf32>
      %c0_7 = arith.constant 0 : index
      %c0_8 = arith.constant 0 : index
      %15 = vector.load %arg9[%c0_7, %c0_8] : memref<16x1xf32, #tpu.memory_space<vmem>>, vector<16x1xf32>
      tpu.vector_store %arg9[%c0_7, %c0_8], %14 {strides = array<i32>} : memref<16x1xf32, #tpu.memory_space<vmem>>, vector<16x1xf32>,
      %cst_9 = arith.constant 0.000000e+00 : f32
      %16 = vector.broadcast %cst_9 : f32 to vector<16x64xf32>
      %c0_10 = arith.constant 0 : index
      %c0_11 = arith.constant 0 : index
      %17 = vector.load %arg10[%c0_10, %c0_11] : memref<16x64xf32, #tpu.memory_space<vmem>>, vector<16x64xf32>
      tpu.vector_store %arg10[%c0_10, %c0_11], %16 {strides = array<i32>} : memref<16x64xf32, #tpu.memory_space<vmem>>, vector<16x64xf32>,
    } else {
    }
    %c16_i32 = arith.constant 16 : i32
    %3 = arith.muli %arg3, %c16_i32 : i32
    %c16_i32_1 = arith.constant 16 : i32
    %4 = arith.muli %arg2, %c16_i32_1 : i32
    %c15_i32 = arith.constant 15 : i32
    %5 = arith.addi %4, %c15_i32 : i32
    %6 = arith.cmpi sle, %3, %5 : i32
    %7 = arith.extui %6 : i1 to i32
    %c0_i32_2 = arith.constant 0 : i32
    %8 = arith.cmpi ne, %7, %c0_i32_2 : i32
    scf.if %8 {
      %c0 = arith.constant 0 : index
      %c0_5 = arith.constant 0 : index
      %c0_6 = arith.constant 0 : index
      %c0_7 = arith.constant 0 : index
      %12 = vector.load %arg4[%c0, %c0_5, %c0_6, %c0_7] : memref<1x1x16x64xbf16, #tpu.memory_space<vmem>>, vector<1x1x16x64xbf16>
      %13 = vector.shape_cast %12 : vector<1x1x16x64xbf16> to vector<16x64xbf16>
      %c0_8 = arith.constant 0 : index
      %c0_9 = arith.constant 0 : index
      %c0_10 = arith.constant 0 : index
      %c0_11 = arith.constant 0 : index
      %14 = vector.load %arg5[%c0_8, %c0_9, %c0_10, %c0_11] : memref<1x1x16x64xbf16, #tpu.memory_space<vmem>>, vector<1x1x16x64xbf16>
      %15 = vector.shape_cast %14 : vector<1x1x16x64xbf16> to vector<16x64xbf16>
      %cst = arith.constant dense<0.000000e+00> : vector<16x16xf32>
      %16 = tpu.matmul %13, %15, %cst {dimension_numbers = #tpu.dot_dimension_numbers<[1], [1], [0], [0], [0, 0, 1, 0], [], []>} : vector<16x64xbf16>, vector<16x64xbf16>, vector<16x16xf32> -> vector<16x16xf32>
      %cst_12 = arith.constant 1.250000e-01 : f32
      %17 = vector.broadcast %cst_12 : f32 to vector<16x16xf32>
      %18 = arith.mulf %16, %17 : vector<16x16xf32>
      %c16_i32_13 = arith.constant 16 : i32
      %19 = arith.muli %arg2, %c16_i32_13 : i32
      %20 = tpu.iota {dimensions = array<i32: 0>} : vector<16x16xi32>
      %21 = vector.broadcast %19 : i32 to vector<16x16xi32>
      %22 = arith.addi %21, %20 : vector<16x16xi32>
      %c16_i32_14 = arith.constant 16 : i32
      %23 = arith.muli %arg3, %c16_i32_14 : i32
      %24 = tpu.iota {dimensions = array<i32: 1>} : vector<16x16xi32>
      %25 = vector.broadcast %23 : i32 to vector<16x16xi32>
      %26 = arith.addi %25, %24 : vector<16x16xi32>
      %27 = arith.cmpi sle, %26, %22 : vector<16x16xi32>
      %cst_15 = arith.constant -1.000000e+30 : f32
      %28 = vector.broadcast %cst_15 : f32 to vector<16x16xf32>
      %29 = arith.select %27, %18, %28 : vector<16x16xi1>, vector<16x16xf32>
      %c0_16 = arith.constant 0 : index
      %c0_17 = arith.constant 0 : index
      %30 = vector.load %arg8[%c0_16, %c0_17] : memref<16x1xf32, #tpu.memory_space<vmem>>, vector<16x1xf32>
      %cst_18 = arith.constant dense<0xFF800000> : vector<16xf32>
      %31 = vector.multi_reduction <maximumf>, %29, %cst_18 [1] : vector<16x16xf32> to vector<16xf32>
      %32 = vector.shape_cast %31 : vector<16xf32> to vector<16x1xf32>
      %33 = arith.maximumf %30, %32 : vector<16x1xf32>
      %34 = arith.subf %30, %33 : vector<16x1xf32>
      %35 = math.exp %34 : vector<16x1xf32>
      %36 = vector.broadcast %33 : vector<16x1xf32> to vector<16x16xf32>
      %37 = arith.subf %29, %36 : vector<16x16xf32>
      %38 = math.exp %37 : vector<16x16xf32>
      %cst_19 = arith.constant 0.000000e+00 : f32
      %39 = vector.broadcast %cst_19 : f32 to vector<16x16xf32>
      %40 = arith.select %27, %38, %39 : vector<16x16xi1>, vector<16x16xf32>
      %c0_20 = arith.constant 0 : index
      %c0_21 = arith.constant 0 : index
      %41 = vector.load %arg9[%c0_20, %c0_21] : memref<16x1xf32, #tpu.memory_space<vmem>>, vector<16x1xf32>
      %42 = arith.mulf %35, %41 : vector<16x1xf32>
      %cst_22 = arith.constant dense<0.000000e+00> : vector<16xf32>
      %43 = vector.multi_reduction <add>, %40, %cst_22 [1] : vector<16x16xf32> to vector<16xf32>
      %44 = vector.shape_cast %43 : vector<16xf32> to vector<16x1xf32>
      %45 = arith.addf %42, %44 : vector<16x1xf32>
      %c0_23 = arith.constant 0 : index
      %c0_24 = arith.constant 0 : index
      %46 = vector.load %arg9[%c0_23, %c0_24] : memref<16x1xf32, #tpu.memory_space<vmem>>, vector<16x1xf32>
      tpu.vector_store %arg9[%c0_23, %c0_24], %45 {strides = array<i32>} : memref<16x1xf32, #tpu.memory_space<vmem>>, vector<16x1xf32>,
      %c0_25 = arith.constant 0 : index
      %c0_26 = arith.constant 0 : index
      %47 = vector.load %arg10[%c0_25, %c0_26] : memref<16x64xf32, #tpu.memory_space<vmem>>, vector<16x64xf32>
      %48 = vector.broadcast %35 : vector<16x1xf32> to vector<16x64xf32>
      %49 = arith.mulf %48, %47 : vector<16x64xf32>
      %50 = arith.truncf %40 : vector<16x16xf32> to vector<16x16xbf16>
      %c0_27 = arith.constant 0 : index
      %c0_28 = arith.constant 0 : index
      %c0_29 = arith.constant 0 : index
      %c0_30 = arith.constant 0 : index
      %51 = vector.load %arg6[%c0_27, %c0_28, %c0_29, %c0_30] : memref<1x1x16x64xbf16, #tpu.memory_space<vmem>>, vector<1x1x16x64xbf16>
      %52 = vector.shape_cast %51 : vector<1x1x16x64xbf16> to vector<16x64xbf16>
      %cst_31 = arith.constant dense<0.000000e+00> : vector<16x64xf32>
      %53 = tpu.matmul %50, %52, %cst_31 {dimension_numbers = #tpu.dot_dimension_numbers<[1], [0], [0], [1], [0, 0, 1, 1], [], []>} : vector<16x16xbf16>, vector<16x64xbf16>, vector<16x64xf32> -> vector<16x64xf32>
      %54 = arith.addf %49, %53 : vector<16x64xf32>
      %c0_32 = arith.constant 0 : index
      %c0_33 = arith.constant 0 : index
      %55 = vector.load %arg10[%c0_32, %c0_33] : memref<16x64xf32, #tpu.memory_space<vmem>>, vector<16x64xf32>
      tpu.vector_store %arg10[%c0_32, %c0_33], %54 {strides = array<i32>} : memref<16x64xf32, #tpu.memory_space<vmem>>, vector<16x64xf32>,
      %c0_34 = arith.constant 0 : index
      %c0_35 = arith.constant 0 : index
      %56 = vector.load %arg8[%c0_34, %c0_35] : memref<16x1xf32, #tpu.memory_space<vmem>>, vector<16x1xf32>
      tpu.vector_store %arg8[%c0_34, %c0_35], %33 {strides = array<i32>} : memref<16x1xf32, #tpu.memory_space<vmem>>, vector<16x1xf32>,
    } else {
    }
    %c0_i32_3 = arith.constant 0 : i32
    %9 = arith.cmpi eq, %arg3, %c0_i32_3 : i32
    %10 = arith.extui %9 : i1 to i32
    %c0_i32_4 = arith.constant 0 : i32
    %11 = arith.cmpi ne, %10, %c0_i32_4 : i32
    scf.if %11 {
      %c0 = arith.constant 0 : index
      %c0_5 = arith.constant 0 : index
      %12 = vector.load %arg9[%c0, %c0_5] : memref<16x1xf32, #tpu.memory_space<vmem>>, vector<16x1xf32>
      %cst = arith.constant 0.000000e+00 : f32
      %13 = vector.broadcast %cst : f32 to vector<16x1xf32>
      %14 = arith.cmpf ole, %12, %13 : vector<16x1xf32>
      %cst_6 = arith.constant 1.000000e+00 : f32
      %15 = vector.broadcast %cst_6 : f32 to vector<16x1xf32>
      %16 = arith.select %14, %15, %12 : vector<16x1xi1>, vector<16x1xf32>
      %c0_7 = arith.constant 0 : index
      %c0_8 = arith.constant 0 : index
      %17 = vector.load %arg10[%c0_7, %c0_8] : memref<16x64xf32, #tpu.memory_space<vmem>>, vector<16x64xf32>
      %18 = vector.broadcast %16 : vector<16x1xf32> to vector<16x64xf32>
      %19 = arith.divf %17, %18 : vector<16x64xf32>
      %20 = arith.truncf %19 : vector<16x64xf32> to vector<16x64xbf16>
      %c0_9 = arith.constant 0 : index
      %c0_10 = arith.constant 0 : index
      %c0_11 = arith.constant 0 : index
      %c0_12 = arith.constant 0 : index
      %21 = vector.load %arg7[%c0_9, %c0_10, %c0_11, %c0_12] : memref<1x1x16x64xbf16, #tpu.memory_space<vmem>>, vector<1x1x16x64xbf16>
      %22 = vector.shape_cast %21 : vector<1x1x16x64xbf16> to vector<16x64xbf16>
      %23 = vector.shape_cast %20 : vector<16x64xbf16> to vector<1x1x16x64xbf16>
      tpu.vector_store %arg7[%c0_9, %c0_10, %c0_11, %c0_12], %23 {strides = array<i32>} : memref<1x1x16x64xbf16, #tpu.memory_space<vmem>>, vector<1x1x16x64xbf16>,
    } else {
    }
    return
  }
  func.func @transform_0(%arg0: i32, %arg1: i32, %arg2: i32, %arg3: i32) -> (i32, i32, i32, i32) {
    %c0_i32 = arith.constant 0 : i32
    %c0_i32_0 = arith.constant 0 : i32
    return %arg0, %arg1, %arg2, %c0_i32 : i32, i32, i32, i32
  }
  func.func @transform_1(%arg0: i32, %arg1: i32, %arg2: i32, %arg3: i32) -> (i32, i32, i32, i32) {
    %c0_i32 = arith.constant 0 : i32
    %c0_i32_0 = arith.constant 0 : i32
    return %arg0, %arg1, %arg3, %c0_i32 : i32, i32, i32, i32
  }
  func.func @transform_2(%arg0: i32, %arg1: i32, %arg2: i32, %arg3: i32) -> (i32, i32, i32, i32) {
    %c0_i32 = arith.constant 0 : i32
    %c0_i32_0 = arith.constant 0 : i32
    return %arg0, %arg1, %arg3, %c0_i32 : i32, i32, i32, i32
  }
  func.func @transform_3(%arg0: i32, %arg1: i32, %arg2: i32, %arg3: i32) -> (i32, i32, i32, i32) {
    %c0_i32 = arith.constant 0 : i32
    %c0_i32_0 = arith.constant 0 : i32
    return %arg0, %arg1, %arg2, %c0_i32 : i32, i32, i32, i32
  }
}

module attributes {stable_mosaic.version = 11 : i64} {
  func.func @_ln_matmul_bias_gelu_kernel(%arg0: i32, %arg1: i32, %arg2: memref<32x128xf32, #tpu.memory_space<vmem>>, %arg3: memref<1x128xf32, #tpu.memory_space<vmem>>, %arg4: memref<1x128xf32, #tpu.memory_space<vmem>>, %arg5: memref<128x512xbf16, #tpu.memory_space<vmem>>, %arg6: memref<1x512xf32, #tpu.memory_space<vmem>>, %arg7: memref<32x512xbf16, #tpu.memory_space<vmem>>, %arg8: memref<32x128xbf16, #tpu.memory_space<vmem>>) attributes {dimension_semantics = [#tpu.dimension_semantics<parallel>, #tpu.dimension_semantics<arbitrary>], iteration_bounds = array<i64: 1, 1>, scalar_prefetch = 0 : i64, scratch_operands = 1 : i64, tpu.core_type = #tpu.core_type<tc>, window_params = [{transform_indices = @transform_0, window_bounds = array<i64: 32, 128>}, {pipeline_mode = #tpu.pipeline_mode<synchronous>, transform_indices = @transform_1, window_bounds = array<i64: 1, 128>}, {pipeline_mode = #tpu.pipeline_mode<synchronous>, transform_indices = @transform_2, window_bounds = array<i64: 1, 128>}, {transform_indices = @transform_3, window_bounds = array<i64: 128, 512>}, {transform_indices = @transform_4, window_bounds = array<i64: 1, 512>}, {transform_indices = @transform_5, window_bounds = array<i64: 32, 512>}]} {
    %c0_i32 = arith.constant 0 : i32
    %0 = arith.cmpi eq, %arg1, %c0_i32 : i32
    %1 = arith.extui %0 : i1 to i32
    %c0_i32_0 = arith.constant 0 : i32
    %2 = arith.cmpi ne, %1, %c0_i32_0 : i32
    scf.if %2 {
      %c0_12 = arith.constant 0 : index
      %c0_13 = arith.constant 0 : index
      %24 = vector.load %arg2[%c0_12, %c0_13] : memref<32x128xf32, #tpu.memory_space<vmem>>, vector<32x128xf32>
      %cst_14 = arith.constant dense<0.000000e+00> : vector<32xf32>
      %25 = vector.multi_reduction <add>, %24, %cst_14 [1] : vector<32x128xf32> to vector<32xf32>
      %26 = vector.shape_cast %25 : vector<32xf32> to vector<32x1xf32>
      %cst_15 = arith.constant 1.280000e+02 : f32
      %27 = vector.broadcast %cst_15 : f32 to vector<32x1xf32>
      %28 = arith.divf %26, %27 : vector<32x1xf32>
      %29 = vector.broadcast %28 : vector<32x1xf32> to vector<32x128xf32>
      %30 = arith.subf %24, %29 : vector<32x128xf32>
      %31 = arith.mulf %30, %30 : vector<32x128xf32>
      %cst_16 = arith.constant dense<0.000000e+00> : vector<32xf32>
      %32 = vector.multi_reduction <add>, %31, %cst_16 [1] : vector<32x128xf32> to vector<32xf32>
      %33 = vector.shape_cast %32 : vector<32xf32> to vector<32x1xf32>
      %cst_17 = arith.constant 1.280000e+02 : f32
      %34 = vector.broadcast %cst_17 : f32 to vector<32x1xf32>
      %35 = arith.divf %33, %34 : vector<32x1xf32>
      %36 = vector.broadcast %28 : vector<32x1xf32> to vector<32x128xf32>
      %37 = arith.subf %24, %36 : vector<32x128xf32>
      %cst_18 = arith.constant 9.99999974E-6 : f32
      %38 = vector.broadcast %cst_18 : f32 to vector<32x1xf32>
      %39 = arith.addf %35, %38 : vector<32x1xf32>
      %40 = math.rsqrt %39 : vector<32x1xf32>
      %41 = vector.broadcast %40 : vector<32x1xf32> to vector<32x128xf32>
      %42 = arith.mulf %37, %41 : vector<32x128xf32>
      %c0_19 = arith.constant 0 : index
      %c0_20 = arith.constant 0 : index
      %43 = vector.load %arg3[%c0_19, %c0_20] : memref<1x128xf32, #tpu.memory_space<vmem>>, vector<1x128xf32>
      %44 = vector.broadcast %43 : vector<1x128xf32> to vector<32x128xf32>
      %45 = arith.mulf %42, %44 : vector<32x128xf32>
      %c0_21 = arith.constant 0 : index
      %c0_22 = arith.constant 0 : index
      %46 = vector.load %arg4[%c0_21, %c0_22] : memref<1x128xf32, #tpu.memory_space<vmem>>, vector<1x128xf32>
      %47 = vector.broadcast %46 : vector<1x128xf32> to vector<32x128xf32>
      %48 = arith.addf %45, %47 : vector<32x128xf32>
      %49 = arith.truncf %48 : vector<32x128xf32> to vector<32x128xbf16>
      %c0_23 = arith.constant 0 : index
      %c0_24 = arith.constant 0 : index
      %50 = vector.load %arg8[%c0_23, %c0_24] : memref<32x128xbf16, #tpu.memory_space<vmem>>, vector<32x128xbf16>
      tpu.vector_store %arg8[%c0_23, %c0_24], %49 {strides = array<i32>} : memref<32x128xbf16, #tpu.memory_space<vmem>>, vector<32x128xbf16>,
    } else {
    }
    %c0 = arith.constant 0 : index
    %c0_1 = arith.constant 0 : index
    %3 = vector.load %arg8[%c0, %c0_1] : memref<32x128xbf16, #tpu.memory_space<vmem>>, vector<32x128xbf16>
    %c0_2 = arith.constant 0 : index
    %c0_3 = arith.constant 0 : index
    %4 = vector.load %arg5[%c0_2, %c0_3] : memref<128x512xbf16, #tpu.memory_space<vmem>>, vector<128x512xbf16>
    %cst = arith.constant dense<0.000000e+00> : vector<32x512xf32>
    %5 = tpu.matmul %3, %4, %cst {dimension_numbers = #tpu.dot_dimension_numbers<[1], [0], [0], [1], [0, 0, 1, 1], [], []>} : vector<32x128xbf16>, vector<128x512xbf16>, vector<32x512xf32> -> vector<32x512xf32>
    %c0_4 = arith.constant 0 : index
    %c0_5 = arith.constant 0 : index
    %6 = vector.load %arg6[%c0_4, %c0_5] : memref<1x512xf32, #tpu.memory_space<vmem>>, vector<1x512xf32>
    %7 = vector.broadcast %6 : vector<1x512xf32> to vector<32x512xf32>
    %8 = arith.addf %5, %7 : vector<32x512xf32>
    %cst_6 = arith.constant 5.000000e-01 : f32
    %9 = vector.broadcast %cst_6 : f32 to vector<32x512xf32>
    %10 = arith.mulf %9, %8 : vector<32x512xf32>
    %cst_7 = arith.constant 4.471500e-02 : f32
    %11 = vector.broadcast %cst_7 : f32 to vector<32x512xf32>
    %12 = arith.mulf %11, %8 : vector<32x512xf32>
    %13 = arith.mulf %12, %8 : vector<32x512xf32>
    %14 = arith.mulf %13, %8 : vector<32x512xf32>
    %15 = arith.addf %8, %14 : vector<32x512xf32>
    %cst_8 = arith.constant 0.797884583 : f32
    %16 = vector.broadcast %cst_8 : f32 to vector<32x512xf32>
    %17 = arith.mulf %16, %15 : vector<32x512xf32>
    %18 = math.tanh %17 : vector<32x512xf32>
    %cst_9 = arith.constant 1.000000e+00 : f32
    %19 = vector.broadcast %cst_9 : f32 to vector<32x512xf32>
    %20 = arith.addf %19, %18 : vector<32x512xf32>
    %21 = arith.mulf %10, %20 : vector<32x512xf32>
    %22 = arith.truncf %21 : vector<32x512xf32> to vector<32x512xbf16>
    %c0_10 = arith.constant 0 : index
    %c0_11 = arith.constant 0 : index
    %23 = vector.load %arg7[%c0_10, %c0_11] : memref<32x512xbf16, #tpu.memory_space<vmem>>, vector<32x512xbf16>
    tpu.vector_store %arg7[%c0_10, %c0_11], %22 {strides = array<i32>} : memref<32x512xbf16, #tpu.memory_space<vmem>>, vector<32x512xbf16>,
    return
  }
  func.func @transform_0(%arg0: i32, %arg1: i32) -> (i32, i32) {
    %c0_i32 = arith.constant 0 : i32
    %c0_i32_0 = arith.constant 0 : i32
    return %arg0, %c0_i32 : i32, i32
  }
  func.func @transform_1(%arg0: i32, %arg1: i32) -> (i32, i32) {
    %c0_i32 = arith.constant 0 : i32
    %c0_i32_0 = arith.constant 0 : i32
    %c0_i32_1 = arith.constant 0 : i32
    return %c0_i32, %c0_i32_0 : i32, i32
  }
  func.func @transform_2(%arg0: i32, %arg1: i32) -> (i32, i32) {
    %c0_i32 = arith.constant 0 : i32
    %c0_i32_0 = arith.constant 0 : i32
    %c0_i32_1 = arith.constant 0 : i32
    return %c0_i32, %c0_i32_0 : i32, i32
  }
  func.func @transform_3(%arg0: i32, %arg1: i32) -> (i32, i32) {
    %c0_i32 = arith.constant 0 : i32
    %c0_i32_0 = arith.constant 0 : i32
    return %c0_i32, %arg1 : i32, i32
  }
  func.func @transform_4(%arg0: i32, %arg1: i32) -> (i32, i32) {
    %c0_i32 = arith.constant 0 : i32
    %c0_i32_0 = arith.constant 0 : i32
    return %c0_i32, %arg1 : i32, i32
  }
  func.func @transform_5(%arg0: i32, %arg1: i32) -> (i32, i32) {
    %c0_i32 = arith.constant 0 : i32
    return %arg0, %arg1 : i32, i32
  }
}

module attributes {stable_mosaic.version = 11 : i64} {
  func.func @_matmul_bias_resid_kernel(%arg0: i32, %arg1: i32, %arg2: i32, %arg3: memref<32x512xbf16, #tpu.memory_space<vmem>>, %arg4: memref<512x128xbf16, #tpu.memory_space<vmem>>, %arg5: memref<1x128xf32, #tpu.memory_space<vmem>>, %arg6: memref<32x128xf32, #tpu.memory_space<vmem>>, %arg7: memref<32x128xf32, #tpu.memory_space<vmem>>, %arg8: memref<32x128xf32, #tpu.memory_space<vmem>>) attributes {dimension_semantics = [#tpu.dimension_semantics<parallel>, #tpu.dimension_semantics<parallel>, #tpu.dimension_semantics<arbitrary>], iteration_bounds = array<i64: 1, 1, 1>, scalar_prefetch = 0 : i64, scratch_operands = 1 : i64, tpu.core_type = #tpu.core_type<tc>, window_params = [{transform_indices = @transform_0, window_bounds = array<i64: 32, 512>}, {transform_indices = @transform_1, window_bounds = array<i64: 512, 128>}, {transform_indices = @transform_2, window_bounds = array<i64: 1, 128>}, {transform_indices = @transform_3, window_bounds = array<i64: 32, 128>}, {transform_indices = @transform_4, window_bounds = array<i64: 32, 128>}]} {
    %c0_i32 = arith.constant 0 : i32
    %0 = arith.cmpi eq, %arg2, %c0_i32 : i32
    %1 = arith.extui %0 : i1 to i32
    %c0_i32_0 = arith.constant 0 : i32
    %2 = arith.cmpi ne, %1, %c0_i32_0 : i32
    scf.if %2 {
      %cst_10 = arith.constant 0.000000e+00 : f32
      %12 = vector.broadcast %cst_10 : f32 to vector<32x128xf32>
      %c0_11 = arith.constant 0 : index
      %c0_12 = arith.constant 0 : index
      %13 = vector.load %arg8[%c0_11, %c0_12] : memref<32x128xf32, #tpu.memory_space<vmem>>, vector<32x128xf32>
      tpu.vector_store %arg8[%c0_11, %c0_12], %12 {strides = array<i32>} : memref<32x128xf32, #tpu.memory_space<vmem>>, vector<32x128xf32>,
    } else {
    }
    %c0 = arith.constant 0 : index
    %c0_1 = arith.constant 0 : index
    %3 = vector.load %arg8[%c0, %c0_1] : memref<32x128xf32, #tpu.memory_space<vmem>>, vector<32x128xf32>
    %c0_2 = arith.constant 0 : index
    %c0_3 = arith.constant 0 : index
    %4 = vector.load %arg3[%c0_2, %c0_3] : memref<32x512xbf16, #tpu.memory_space<vmem>>, vector<32x512xbf16>
    %c0_4 = arith.constant 0 : index
    %c0_5 = arith.constant 0 : index
    %5 = vector.load %arg4[%c0_4, %c0_5] : memref<512x128xbf16, #tpu.memory_space<vmem>>, vector<512x128xbf16>
    %cst = arith.constant dense<0.000000e+00> : vector<32x128xf32>
    %6 = tpu.matmul %4, %5, %cst {dimension_numbers = #tpu.dot_dimension_numbers<[1], [0], [0], [1], [0, 0, 1, 1], [], []>} : vector<32x512xbf16>, vector<512x128xbf16>, vector<32x128xf32> -> vector<32x128xf32>
    %7 = arith.addf %3, %6 : vector<32x128xf32>
    %c0_6 = arith.constant 0 : index
    %c0_7 = arith.constant 0 : index
    %8 = vector.load %arg8[%c0_6, %c0_7] : memref<32x128xf32, #tpu.memory_space<vmem>>, vector<32x128xf32>
    tpu.vector_store %arg8[%c0_6, %c0_7], %7 {strides = array<i32>} : memref<32x128xf32, #tpu.memory_space<vmem>>, vector<32x128xf32>,
    %c0_i32_8 = arith.constant 0 : i32
    %9 = arith.cmpi eq, %arg2, %c0_i32_8 : i32
    %10 = arith.extui %9 : i1 to i32
    %c0_i32_9 = arith.constant 0 : i32
    %11 = arith.cmpi ne, %10, %c0_i32_9 : i32
    scf.if %11 {
      %c0_10 = arith.constant 0 : index
      %c0_11 = arith.constant 0 : index
      %12 = vector.load %arg8[%c0_10, %c0_11] : memref<32x128xf32, #tpu.memory_space<vmem>>, vector<32x128xf32>
      %c0_12 = arith.constant 0 : index
      %c0_13 = arith.constant 0 : index
      %13 = vector.load %arg5[%c0_12, %c0_13] : memref<1x128xf32, #tpu.memory_space<vmem>>, vector<1x128xf32>
      %14 = vector.broadcast %13 : vector<1x128xf32> to vector<32x128xf32>
      %15 = arith.addf %12, %14 : vector<32x128xf32>
      %c0_14 = arith.constant 0 : index
      %c0_15 = arith.constant 0 : index
      %16 = vector.load %arg6[%c0_14, %c0_15] : memref<32x128xf32, #tpu.memory_space<vmem>>, vector<32x128xf32>
      %17 = arith.addf %15, %16 : vector<32x128xf32>
      %c0_16 = arith.constant 0 : index
      %c0_17 = arith.constant 0 : index
      %18 = vector.load %arg7[%c0_16, %c0_17] : memref<32x128xf32, #tpu.memory_space<vmem>>, vector<32x128xf32>
      tpu.vector_store %arg7[%c0_16, %c0_17], %17 {strides = array<i32>} : memref<32x128xf32, #tpu.memory_space<vmem>>, vector<32x128xf32>,
    } else {
    }
    return
  }
  func.func @transform_0(%arg0: i32, %arg1: i32, %arg2: i32) -> (i32, i32) {
    %c0_i32 = arith.constant 0 : i32
    return %arg0, %arg2 : i32, i32
  }
  func.func @transform_1(%arg0: i32, %arg1: i32, %arg2: i32) -> (i32, i32) {
    %c0_i32 = arith.constant 0 : i32
    return %arg2, %arg1 : i32, i32
  }
  func.func @transform_2(%arg0: i32, %arg1: i32, %arg2: i32) -> (i32, i32) {
    %c0_i32 = arith.constant 0 : i32
    %c0_i32_0 = arith.constant 0 : i32
    return %c0_i32, %arg1 : i32, i32
  }
  func.func @transform_3(%arg0: i32, %arg1: i32, %arg2: i32) -> (i32, i32) {
    %c0_i32 = arith.constant 0 : i32
    return %arg0, %arg1 : i32, i32
  }
  func.func @transform_4(%arg0: i32, %arg1: i32, %arg2: i32) -> (i32, i32) {
    %c0_i32 = arith.constant 0 : i32
    return %arg0, %arg1 : i32, i32
  }
}

</mosaic_0001>

<bundles_post_ra>
// kernel: encoder_block_forward.4
= control target key start
LH: loop header
LB: loop body
LE: loop exit
PB: predicated region body
PF: predicated region fallthrough
CT: control target
= control target key end

     0   :  { %9 = vsyncpa [#allocation4], 0  ;;  %s855_s0 = inlined_call_operand.hbm [shape: f32[32,128], index: 0, kind: input, shape index: {}]   ;;  %s856_s1 = inlined_call_operand.hbm [shape: f32[1,128], index: 1, kind: input, shape index: {}]   ;;  %s857_s2 = inlined_call_operand.hbm [shape: f32[1,128], index: 2, kind: input, shape index: {}]   ;;  %s858_s3 = inlined_call_operand.hbm [shape: bf16[128,384], index: 3, kind: input, shape index: {}]   ;;  %s859_s4 = inlined_call_operand.hbm [shape: bf16[32,384], index: 4, kind: output, shape index: {}]  }
   0x1   :  { %10 = vsyncpa [#allocation7], 0 }
   0x2   :  { %11 = vsyncpa [#allocation10], 0 }
   0x3   :  { %12 = vsyncpa [#allocation5], 0  ;;  %s720_s15 = smov [#allocation6]   ;;  %s721_s17 = smov [#allocation3]  }
   0x4   :  { %s31_s16 = sshll.u32 %s720_s15, 4  ;;  %s18_s18 = sshll.u32 %s721_s17, 4  ;;  %s32_s16 = int_to_ptr.vmem [resolvable:$true] %s31_s16  ;;  %s755_s18 = int_to_ptr.vmem [resolvable:$true] %s18_s18 }
   0x5   :  { %s602_s21 = scalar_lea.hbm %s856_s1, 16 }
   0x6   :  { %p603_p0 = scmp.ne.s32.totalorder %s856_s1, %s602_s21  ;;  %p606_p1 = scmp.lt.u32.totalorder %s602_s21, %s856_s1 }
   0x8   :  { %p608_p2 = pnand %p606_p1, %p603_p0 }
   0xa   :  { %611 = shalt.err (!%p608_p2)
}
   0xb   :  { %s612_s26 = scalar_lea.vmem %s32_s16, 16  ;;  %s616_s27 = scalar_lea.vmem %s32_s16, 32 }
   0xc   :  { %p613_p3 = scmp.ne.s32.totalorder %s32_s16, %s612_s26  ;;  %p617_p4 = scmp.lt.s32.totalorder %s32_s16, %s32_s16 }
   0xd   :  { %p618_p5 = scmp.lt.s32.totalorder %s616_s27, %s612_s26 }
   0xf   :  { %p619_p6 = por %p618_p5, %p617_p4 }
  0x11   :  { %p620_p7 = pnand %p619_p6, %p613_p3 }
  0x13   :  { %623 = shalt.err (!%p620_p7)
}
  0x14   :  { %34 = dma.hbm_to_vmem [thread:$0]  %s856_s1, 16, %s32_s16, [#allocation7]  }
  0x15   :  { %s624_s6 = scalar_lea.hbm %s855_s0, 512 }
  0x16   :  { %p625_p8 = scmp.ne.s32.totalorder %s855_s0, %s624_s6  ;;  %p628_p9 = scmp.lt.u32.totalorder %s624_s6, %s855_s0 }
  0x18   :  { %p630_p10 = pnand %p628_p9, %p625_p8 }
  0x1a   :  { %633 = shalt.err (!%p630_p10)
}
  0x1b   :  { %s634_s11 = scalar_lea.vmem %s755_s18, 512  ;;  %p639_p12 = scmp.lt.s32.totalorder %s755_s18, %s755_s18 }
  0x1c   :  { %p635_p11 = scmp.ne.s32.totalorder %s755_s18, %s634_s11  ;;  %p640_p13 = scmp.lt.s32.totalorder %s634_s11, %s634_s11 }
  0x1e   :  { %p641_p0 = por %p640_p13, %p639_p12 }
  0x20   :  { %p642_p1 = pnand %p641_p0, %p635_p11 }
  0x22   :  { %645 = shalt.err (!%p642_p1)
}
  0x23   :  { %s722_s1 = smov 128   ;;  %s723_s12 = smov 8  }
  0x24   :  { %24 = dma.hbm_to_vmem [thread:$0]  %s855_s0, 512, %s755_s18, [#allocation4], %s722_s1, %s722_s1, %s723_s12  }
  0x25   :  { %s724_s15 = smov [#allocation8]   ;;  %s725_s17 = smov [#allocation9]  }
  0x26   :  { %s41_s16 = sshll.u32 %s724_s15, 4  ;;  %s50_s19 = sshll.u32 %s725_s17, 4  ;;  %s42_s16 = int_to_ptr.vmem [resolvable:$true] %s41_s16  ;;  %s786_s19 = int_to_ptr.vmem [resolvable:$true] %s50_s19 }
  0x27   :  { %s646_s22 = scalar_lea.hbm %s857_s2, 16 }
  0x28   :  { %p647_p2 = scmp.ne.s32.totalorder %s857_s2, %s646_s22  ;;  %p650_p3 = scmp.lt.u32.totalorder %s646_s22, %s857_s2 }
  0x2a   :  { %p652_p4 = pnand %p650_p3, %p647_p2 }
  0x2c   :  { %655 = shalt.err (!%p652_p4)
}
  0x2d   :  { %s656_s0 = scalar_lea.vmem %s42_s16, 16  ;;  %s660_s18 = scalar_lea.vmem %s42_s16, 32 }
  0x2e   :  { %p657_p5 = scmp.ne.s32.totalorder %s42_s16, %s656_s0  ;;  %p661_p6 = scmp.lt.s32.totalorder %s42_s16, %s42_s16 }
  0x2f   :  { %p662_p7 = scmp.lt.s32.totalorder %s660_s18, %s656_s0 }
  0x31   :  { %p663_p8 = por %p662_p7, %p661_p6 }
  0x33   :  { %p664_p9 = pnand %p663_p8, %p657_p5 }
  0x35   :  { %667 = shalt.err (!%p664_p9)
}
  0x36   :  { %44 = dma.hbm_to_vmem [thread:$0]  %s857_s2, 16, %s42_s16, [#allocation7]  }
  0x37   :  { %s668_s5 = scalar_lea.hbm %s858_s3, 3072 }
  0x38   :  { %p669_p10 = scmp.ne.s32.totalorder %s858_s3, %s668_s5  ;;  %p672_p11 = scmp.lt.u32.totalorder %s668_s5, %s858_s3 }
  0x3a   :  { %p674_p12 = pnand %p672_p11, %p669_p10 }
  0x3c   :  { %677 = shalt.err (!%p674_p12)
}
  0x3d   :  { %s678_s10 = scalar_lea.vmem %s786_s19, 3072  ;;  %p683_p0 = scmp.lt.s32.totalorder %s786_s19, %s786_s19 }
  0x3e   :  { %p679_p13 = scmp.ne.s32.totalorder %s786_s19, %s678_s10  ;;  %p684_p1 = scmp.lt.s32.totalorder %s678_s10, %s678_s10 }
  0x40   :  { %p685_p2 = por %p684_p1, %p683_p0 }
  0x42   :  { %p686_p3 = pnand %p685_p2, %p679_p13 }
  0x44   :  { %689 = shalt.err (!%p686_p3)
}
  0x45   :  { %s726_s2 = smov 192   ;;  %s727_s11 = smov 12  }
  0x46   :  { %56 = dma.hbm_to_vmem [thread:$0]  %s858_s3, 3072, %s786_s19, [#allocation10], %s726_s2, %s726_s2, %s727_s11  }
  0x47   :  { %712 = dma.done.wait [#allocation4], 512  }
  0x48   :  { %713 = vsyncadd [#allocation4], 4294966784 }
  0x49   :  { %714 = dma.done.wait [#allocation7], 32  }
  0x4a   :  { %715 = vsyncadd [#allocation7], 4294967264 }
  0x4b   :  { %716 = dma.done.wait [#allocation10], 3072  }
  0x4c   :  { %717 = vsyncadd [#allocation10], 4294964224  ;;  %v74_v0 = vld [vmem:[#allocation3] sm:$0xff]  ;;  %v76_v1 = vld [vmem:[#allocation3 + $0x10] sm:$0xff]  ;;  %v728_v39 = vmov 0   ;;  %s729_s3 = smov [#allocation11]  }
  0x4d   :  { %v75_v2 = vld [vmem:[#allocation3 + $0x8] sm:$0xff]  ;;  %78 = vadd.xlane.f32.xlu0 %v74_v0  ;;  %82 = vadd.xlane.f32.xlu1 %v76_v1  ;;  %v77_v3 = vld [vmem:[#allocation3 + $0x18] sm:$0xff]  ;;  %v564_v5 = vld [vmem:[#allocation9] ss:$12 sps:$4 sm:$0xff]   ;;  %s466_s13 = sshll.u32 %s729_s3, 4  ;;  %s467_s13 = int_to_ptr.vmem [resolvable:$true] %s466_s13 }
  0x4e   :  { %v562_v4 = vld [vmem:[#allocation9 + $0x4] ss:$12 sps:$4 sm:$0xff]   ;;  %v565_v6 = vld [vmem:[#allocation9 + $0x1c] ss:$12 sps:$4 sm:$0xff]   ;;  %v569_v25 = vld [vmem:[#allocation9 + $0x34] ss:$12 sps:$4 sm:$0xff]   ;;  %343 = vmatprep.mubr.bf16.mxu0 %v728_v39  ;;  %p695_p5 = scmp.lt.s32.totalorder %s467_s13, %s467_s13 }
  0x4f   :  { %v567_v7 = vld [vmem:[#allocation9 + $0x8] ss:$12 sps:$4 sm:$0xff]   ;;  %311 = vmatprep.subr.bf16.mxu0 %v562_v4  ;;  %v568_v24 = vld [vmem:[#allocation9 + $0x18] ss:$12 sps:$4 sm:$0xff]   ;;  %v571_v26 = vld [vmem:[#allocation9 + $0x20] ss:$12 sps:$4 sm:$0xff]  }
  0x50   :  { %312 = vmatpush1.bf16.msra.mxu0 %v564_v5  ;;  %532 = vmatprep.subr.bf16.mxu1 %v567_v7  ;;  %v572_v27 = vld [vmem:[#allocation9 + $0x30] ss:$12 sps:$4 sm:$0xff]   ;;  %v573_v28 = vld [vmem:[#allocation9 + $0x4c] ss:$12 sps:$4 sm:$0xff]   ;;  %v576_v30 = vld [vmem:[#allocation9 + $0x48] ss:$12 sps:$4 sm:$0xff]  }
  0x51   :  { %80 = vadd.xlane.f32.xlu0 %v75_v2  ;;  %84 = vadd.xlane.f32.xlu1 %v77_v3  ;;  %v575_v29 = vld [vmem:[#allocation9 + $0x38] ss:$12 sps:$4 sm:$0xff]   ;;  %v579_v32 = vld [vmem:[#allocation9 + $0x50] ss:$12 sps:$4 sm:$0xff]   ;;  %v580_v33 = vld [vmem:[#allocation9 + $0x60] ss:$12 sps:$4 sm:$0xff]  }
  0x52   :  { %313 = vmatprep.subr.bf16.mxu0 %v565_v6  ;;  %533 = vmatpush3.bf16.msra.mxu1 %v567_v7  ;;  %v577_v31 = vld [vmem:[#allocation9 + $0x64] ss:$12 sps:$4 sm:$0xff]   ;;  %v581_v34 = vld [vmem:[#allocation9 + $0x7c] ss:$12 sps:$4 sm:$0xff]   ;;  %v585_v37 = vld [vmem:[#allocation9 + $0x94] ss:$12 sps:$4 sm:$0xff]  }
  0x53   :  { %534 = vmatprep.subr.bf16.mxu1 %v571_v26  ;;  %v583_v35 = vld [vmem:[#allocation9 + $0x68] ss:$12 sps:$4 sm:$0xff]   ;;  %v584_v36 = vld [vmem:[#allocation9 + $0x78] ss:$12 sps:$4 sm:$0xff]   ;;  %v587_v38 = vld [vmem:[#allocation9 + $0x80] ss:$12 sps:$4 sm:$0xff]  }
  0x54   :  { %314 = vmatpush1.bf16.msra.mxu0 %v568_v24  ;;  %v588_v40 = vld [vmem:[#allocation9 + $0x90] ss:$12 sps:$4 sm:$0xff]   ;;  %v589_v41 = vld [vmem:[#allocation9 + $0xac] ss:$12 sps:$4 sm:$0xff]   ;;  %v592_v43 = vld [vmem:[#allocation9 + $0xa8] ss:$12 sps:$4 sm:$0xff]  }
  0x55   :  { %315 = vmatprep.subr.bf16.mxu0 %v569_v25  ;;  %v591_v42 = vld [vmem:[#allocation9 + $0x98] ss:$12 sps:$4 sm:$0xff]   ;;  %v593_v44 = vld [vmem:[#allocation9 + $0xb0] ss:$12 sps:$4 sm:$0xff]   ;;  %s690_s14 = scalar_lea.vmem %s467_s13, 768 }
  0x56   :  { %535 = vmatpush3.bf16.msra.mxu1 %v571_v26  ;;  %v480_v59 = vld [vmem:[#allocation6] ss:$0 sm:$0xff]  ;;  %p691_p4 = scmp.ne.s32.totalorder %s467_s13, %s690_s14  ;;  %p696_p6 = scmp.lt.s32.totalorder %s690_s14, %s690_s14 }
  0x57   :  { %536 = vmatprep.subr.bf16.mxu1 %v575_v29 }
  0x58   :  { %316 = vmatpush1.bf16.msra.mxu0 %v572_v27  ;;  %p697_p7 = por %p696_p6, %p695_p5 }
  0x59   :  { %317 = vmatprep.subr.bf16.mxu0 %v573_v28 }
  0x5a   :  { %537 = vmatpush3.bf16.msra.mxu1 %v575_v29  ;;  %p698_p8 = pnand %p697_p7, %p691_p4 }
  0x5b   :  { %538 = vmatprep.subr.bf16.mxu1 %v579_v32 }
  0x5c   :  { %318 = vmatpush1.bf16.msra.mxu0 %v576_v30 }
  0x5d   :  { %319 = vmatprep.subr.bf16.mxu0 %v577_v31 }
  0x5e   :  { %539 = vmatpush3.bf16.msra.mxu1 %v579_v32 }
  0x5f   :  { %540 = vmatprep.subr.bf16.mxu1 %v583_v35 }
  0x60   :  { %320 = vmatpush1.bf16.msra.mxu0 %v580_v33 }
  0x61   :  { %321 = vmatprep.subr.bf16.mxu0 %v581_v34 }
  0x62   :  { %541 = vmatpush3.bf16.msra.mxu1 %v583_v35 }
  0x63   :  { %542 = vmatprep.subr.bf16.mxu1 %v587_v38 }
  0x64   :  { %322 = vmatpush1.bf16.msra.mxu0 %v584_v36 }
  0x65   :  { %323 = vmatprep.subr.bf16.mxu0 %v585_v37 }
  0x66   :  { %543 = vmatpush3.bf16.msra.mxu1 %v587_v38 }
  0x67   :  { %544 = vmatprep.subr.bf16.mxu1 %v591_v42 }
  0x68   :  { %324 = vmatpush1.bf16.msra.mxu0 %v588_v40 }
  0x69   :  { %325 = vmatprep.subr.bf16.mxu0 %v589_v41 }
  0x6a   :  { %545 = vmatpush3.bf16.msra.mxu1 %v591_v42 }
  0x6b   :  { %546 = vmatprep.subr.bf16.mxu1 %v593_v44 }
  0x6c   :  { %326 = vmatpush1.bf16.msra.mxu0 %v592_v43 }
  0x6e   :  { %547 = vmatpush3.bf16.msra.mxu1 %v593_v44 }
  0xda   :  { %v79_v8 = vpop.xlane.xlu0 %78  ;;  %v83_v9 = vpop.xlane.xlu1 %82 }
  0xdb   :  { %v87_v10 = vmul.f32 0.0078125, %v79_v8  ;;  %v89_v11 = vmul.f32 0.0078125, %v83_v9 }
  0xdd   :  { %v820_v12 = vsub.f32 %v74_v0, %v87_v10  ;;  %v822_v13 = vsub.f32 %v76_v1, %v89_v11  ;;  %v481_v0 = vld [vmem:[#allocation8] ss:$0 sm:$0xff] }
  0xde   :  { %v81_v14 = vpop.xlane.xlu0 %80  ;;  %v85_v15 = vpop.xlane.xlu1 %84 }
  0xdf   :  { %v88_v16 = vmul.f32 0.0078125, %v81_v14  ;;  %v95_v17 = vmul.f32 %v820_v12, %v820_v12  ;;  %v90_v18 = vmul.f32 0.0078125, %v85_v15  ;;  %v97_v21 = vmul.f32 %v822_v13, %v822_v13 }
  0xe1   :  { %v826_v19 = vsub.f32 %v75_v2, %v88_v16  ;;  %99 = vadd.xlane.f32.xlu0 %v95_v17  ;;  %v828_v20 = vsub.f32 %v77_v3, %v90_v18 }
  0xe3   :  { %v96_v22 = vmul.f32 %v826_v19, %v826_v19  ;;  %v98_v23 = vmul.f32 %v828_v20, %v828_v20 }
  0xe5   :  { %103 = vadd.xlane.f32.xlu0 %v97_v21  ;;  %101 = vadd.xlane.f32.xlu1 %v96_v22 }
  0xe9   :  { %105 = vadd.xlane.f32.xlu1 %v98_v23 }
 0x16e   :  { %v100_v45 = vpop.xlane.xlu0 %99 }
 0x16f   :  { %v107_v46 = vmul.f32 0.0078125, %v100_v45 }
 0x171   :  { %v111_v47 = vadd.f32 1e-05, %v107_v46 }
 0x172   :  { %v102_v48 = vpop.xlane.xlu1 %101  ;;  %v104_v49 = vpop.xlane.xlu0 %103 }
 0x173   :  { %594 = vrsqrt.f32 %v111_v47  ;;  %v108_v50 = vmul.f32 0.0078125, %v102_v48  ;;  %v109_v51 = vmul.f32 0.0078125, %v104_v49 }
 0x175   :  { %v112_v52 = vadd.f32 1e-05, %v108_v50  ;;  %v113_v53 = vadd.f32 1e-05, %v109_v51 }
 0x176   :  { %v106_v54 = vpop.xlane.xlu1 %105 }
 0x177   :  { %596 = vrsqrt.f32 %v112_v52  ;;  %v110_v55 = vmul.f32 0.0078125, %v106_v54 }
 0x178   :  { %598 = vrsqrt.f32 %v113_v53 }
 0x179   :  { %v114_v56 = vadd.f32 1e-05, %v110_v55 }
 0x17b   :  { %600 = vrsqrt.f32 %v114_v56 }
 0x17d   :  { %v595_v57 = vpop.eup %594 }
 0x17e   :  { %v119_v58 = vmul.f32 %v595_v57, %v820_v12 }
 0x180   :  { %v130_v63 = vmul.f32 %v480_v59, %v119_v58 }
 0x181   :  { %v597_v60 = vpop.eup %596 }
 0x182   :  { %v599_v61 = vpop.eup %598  ;;  %v120_v62 = vmul.f32 %v597_v60, %v826_v19  ;;  %v141_v4 = vadd.f32 %v481_v0, %v130_v63 }
 0x183   :  { %v121_v1 = vmul.f32 %v599_v61, %v822_v13 }
 0x184   :  { %v131_v2 = vmul.f32 %v480_v59, %v120_v62 }
 0x185   :  { %v601_v3 = vpop.eup %600  ;;  %v132_v7 = vmul.f32 %v480_v59, %v121_v1 }
 0x186   :  { %v142_v5 = vadd.f32 %v481_v0, %v131_v2  ;;  %v122_v6 = vmul.f32 %v601_v3, %v828_v20 }
 0x187   :  { %v143_v10 = vadd.f32 %v481_v0, %v132_v7 }
 0x188   :  { %v145_v8 = vpack.c.bf16 %v142_v5, %v141_v4  ;;  %v133_v9 = vmul.f32 %v480_v59, %v122_v6 }
 0x18a   :  { %344 = vmatmul.mubr.bf16.vlgmr.msra.gmra.mrb[0].mxu0 %v145_v8  ;;  %548 = vmatprep.mubr.bf16.mxu1 %v145_v8  ;;  %v144_v11 = vadd.f32 %v481_v0, %v133_v9 }
 0x18b   :  { %353 = vmatprep.mubr.bf16.mxu0 %v728_v39 }
 0x18c   :  { %v146_v12 = vpack.c.bf16 %v144_v11, %v143_v10 }
 0x18e   :  { %549 = vmatmul.mubr.bf16.vlgmr.msra.gmra.mrb[0].mxu1 %v146_v12 }
 0x192   :  { %354 = vmatmul.mubr.bf16.gmra.mrb[4].mxu0 %v146_v12 }
 0x25d   :  { %v345_v14 = vpop.f32.mrb[0].mxu0 }
 0x25e   :  { %v347_v15 = vpop.f32.mrb[1].mxu0 }
 0x25f   :  { %v514_v13 = vpack.c.bf16 %v347_v15, %v345_v14  ;;  %v349_v16 = vpop.f32.mrb[2].mxu0 }
 0x260   :  { %v351_v17 = vpop.f32.mrb[3].mxu0 }
 0x261   :  { %453 = vst [vmem:[#allocation11] sm:$0xff] %v514_v13  ;;  %v516_v18 = vpack.c.bf16 %v351_v17, %v349_v16  ;;  %v550_v19 = vpop.f32.mrb[0].mxu1 }
 0x262   :  { %v519_v20 = vpack.c.bf16 %v550_v19, %v550_v19  ;;  %v398_v21 = vpop.f32.mrb[1].mxu1 }
 0x263   :  { %455 = vst [vmem:[#allocation11 + $0xc] sm:$0xff] %v516_v18  ;;  %v515_v22 = vpack.c.bf16 %v398_v21, %v398_v21  ;;  %v551_v23 = vpop.f32.mrb[2].mxu1 }
 0x264   :  { %458 = vst [vmem:[#allocation11 + $0x20] sm:$0xf] %v519_v20  ;;  %v521_v24 = vpack.c.bf16 %v551_v23, %v551_v23  ;;  %v401_v25 = vpop.f32.mrb[3].mxu1 }
 0x265   :  { %454 = vst [vmem:[#allocation11 + $0x8] sm:$0xf] %v515_v22  ;;  %v517_v26 = vpack.c.bf16 %v401_v25, %v401_v25  ;;  %v355_v27 = vpop.f32.mrb[4].mxu0 }
 0x266   :  { %460 = vst [vmem:[#allocation11 + $0x2c] sm:$0xf] %v521_v24  ;;  %v357_v28 = vpop.f32.mrb[5].mxu0 }
 0x267   :  { %456 = vst [vmem:[#allocation11 + $0x14] sm:$0xf] %v517_v26  ;;  %v518_v29 = vpack.c.bf16 %v357_v28, %v355_v27  ;;  %v359_v30 = vpop.f32.mrb[6].mxu0 }
 0x268   :  { %v361_v31 = vpop.f32.mrb[7].mxu0 }
 0x269   :  { %457 = vst [vmem:[#allocation11 + $0x18] sm:$0xff] %v518_v29  ;;  %v520_v32 = vpack.c.bf16 %v361_v31, %v359_v30 }
 0x26b   :  { %459 = vst [vmem:[#allocation11 + $0x24] sm:$0xff] %v520_v32 }
 0x26c   :  { %701 = shalt.err (!%p698_p8)
}
 0x26d   :  { %s702_s17 = scalar_lea.hbm %s859_s4, 768 }
 0x26e   :  { %p703_p9 = scmp.ne.s32.totalorder %s859_s4, %s702_s17  ;;  %p706_p10 = scmp.lt.u32.totalorder %s702_s17, %s859_s4 }
 0x270   :  { %p708_p11 = pnand %p706_p10, %p703_p9 }
 0x272   :  { %711 = shalt.err (!%p708_p11)
}
 0x273   :  { %472 = dma.vmem_to_hbm [thread:$0]  %s467_s13, 768, %s859_s4, [#allocation5], %s726_s2, %s726_s2, %s727_s11  }
 0x274   :  { %718 = dma.done.wait [#allocation5], 768  }
 0x275   :  { %719 = vsyncadd [#allocation5], 4294966528 }
 0x276   :  { %476 = vsyncpa [#allocation4], 1 }
 0x277   :  { %477 = vsyncpa [#allocation7], 1 }
 0x278   :  { %478 = vsyncpa [#allocation10], 1 }
 0x279   :  { %479 = vsyncpa [#allocation5], 1 }

// kernel: encoder_block_forward.5
= control target key start
LH: loop header
LB: loop body
LE: loop exit
PB: predicated region body
PF: predicated region fallthrough
CT: control target
= control target key end

     0   :  { %s1470_s0 = inlined_call_operand.hbm [shape: bf16[2,2,16,64], index: 0, kind: input, shape index: {}]   ;;  %s1471_s1 = inlined_call_operand.hbm [shape: bf16[2,2,16,64], index: 1, kind: input, shape index: {}]   ;;  %s1472_s2 = inlined_call_operand.hbm [shape: bf16[2,2,16,64], index: 2, kind: input, shape index: {}]   ;;  %s1473_s3 = inlined_call_operand.hbm [shape: bf16[2,2,16,64], index: 3, kind: output, shape index: {}]  }
   0x1   :  { %1485 = sst [smem:[#allocation19_spill]] %s1470_s0 }
   0x2   :  { %1486 = sst [smem:[#allocation20_spill]] %s1471_s1 }
   0x3   :  { %8 = vsyncpa [#allocation6], 0 }
   0x4   :  { %10 = vsyncpa [#allocation6 + $0x1], 0 }
   0x5   :  { %11 = vsyncpa [#allocation9], 0 }
   0x6   :  { %13 = vsyncpa [#allocation9 + $0x1], 0 }
   0x7   :  { %14 = vsyncpa [#allocation7], 0 }
   0x8   :  { %16 = vsyncpa [#allocation7 + $0x1], 0  ;;  %s1143_s12 = smov 0   ;;  %s1145_s13 = smov 0  }
   0x9   :  { %s1147_s14 = smov 0   ;;  %s1149_s15 = smov 0  }
   0xa   :  { %s1151_s16 = smov 0   ;;  %s1153_s17 = smov 0  }
   0xb   :  { %s1155_s18 = smov 0   ;;  %s1157_s19 = smov 0  }
   0xc LB: > { %1487 = sst [smem:[#allocation15_spill]] %s1101_s17  ;;  %s1184_s20 = sadd.s32 4294967295, %s1109_s19   ;;  %s1109_s19 = sphi %s1157_s19, %s22_s19   ;;  %s1105_s18 = sphi %s1155_s18, %s1511_s18   ;;  %s1101_s17 = sphi %s1153_s17, %s1510_s17   ;;  %s1097_s16 = sphi %s1151_s16, %s1509_s16   ;;  %s1093_s15 = sphi %s1149_s15, %s1508_s15   ;;  %s1089_s14 = sphi %s1147_s14, %s1514_s14   ;;  %s1085_s13 = sphi %s1145_s13, %s1513_s13   ;;  %s1081_s12 = sphi %s1143_s12, %s1512_s12  }
   0xd   : > { %1488 = sst [smem:[#allocation16_spill]] %s1105_s18  ;;  %s753_s21 = sadd.s32 4294967294, %s1109_s19  }
   0xe   : > { %s44_s22 = sadd.s32 1, %s1101_s17  ;;  %s48_s23 = sadd.s32 1, %s1105_s18 }
   0xf   : > { %p46_p0 = scmp.ge.s32.totalorder %s44_s22, 2  ;;  %s59_s24 = sadd.s32 1, %s1089_s14 }
  0x10   : > { %p66_p1 = scmp.ne.s32.totalorder %s1089_s14, %s1085_s13  ;;  %p67_p2 = scmp.eq.s32.totalorder %s1109_s19, 0 }
  0x11   : > { %s1516_s22 = smov (%p46_p0, %s44_s22), 0  ;;  %s1518_s23 = smov (!%p46_p0, %s48_s23), %s1105_s18 }
  0x12   : > { %1489 = sst [smem:[#allocation17_spill]] %s1516_s22  ;;  %s53_s25 = ssub.s32 %s1101_s17, %s1516_s22 }
  0x13   : > { %p1198_p3 = por %p67_p2, %p66_p1  ;;  %p50_p4 = scmp.ge.s32.totalorder %s1518_s23, 2 }
  0x14   : > { %p72_p5 = scmp.ne.s32.totalorder %s1085_s13, %s1081_s12  ;;  %p73_p6 = scmp.eq.s32.totalorder %s1184_s20, 0 }
  0x15   : > { %p160_p7 = scmp.eq.s32.totalorder %s1184_s20, 3  ;;  %s1520_s23 = smov (%p50_p4, %s1518_s23), 0 }
  0x16   : > { %1491 = sst [smem:[#allocation18_spill]] %s1520_s23  ;;  %p1208_p8 = por %p73_p6, %p72_p5 }
  0x17   : > { %p1212_p9 = por %p160_p7, %p66_p1  ;;  %s52_s29 = ssub.s32 %s1105_s18, %s1520_s23 }
  0x18   : > { %s1492_s27 = scalar_select %p1208_p8, 1, 0 }
  0x19   : > { %s1493_s28 = scalar_select %p1212_p9, 1, 0 }
  0x1a   : > { %p166_p10 = scmp.eq.s32.totalorder %s753_s21, 3  ;;  %s54_s30 = sor.u32 %s53_s25, %s52_s29 }
  0x1b   : > { %p57_p11 = scmp.eq.s32.totalorder %s54_s30, 0  ;;  %p826_p13 = scmp.lt.s32.totalorder %s1109_s19, 4 }
  0x1c   : > { %p1218_p12 = por %p166_p10, %p72_p5  ;;  %s1474_s5 = sand.u32 1, %s1089_s14  }
  0x1d   : > { %s1225_s6 = scalar_select %p57_p11, %s1089_s14, %s59_s24  }
  0x1e   : > { %s1494_s4 = scalar_select %p1218_p12, 1, 0 }
  0x1f   : > { %s1229_s7 = sshll.u32 %s1474_s5, 3  ;;  %s757_s8 = sshll.u32 %s1101_s17, 1 }
  0x20   : > { %s758_s9 = sshll.u32 %s1105_s18, 2  ;;  %p1235_p0 = pnand %p826_p13, %p1198_p3 }
  0x21   : > { %s198_s11 = sadd.s32 %s758_s9, %s757_s8  ;;  %s211_s25 = sand.u32 1, %s1109_s19  }
  0x22   : > { %s1239_s21 = sshll.u32 %s198_s11, 6  ;;  %s1496_s1 = sld [smem:[#allocation20_spill]] }
  0x23   : > { %s215_s26 = scalar_lea.vmem [#allocation8], %s1229_s7  ;;  %s1252_s23 = scalar_lea.sflag [#allocation9], %s211_s25 }
  0x24   : > { %s226_s5 = sshll.u32 %s215_s26, 4  ;;  %p1258_p3 = pneg %p1235_p0  ;;  %s1249_s5 = int_to_ptr.vmem [resolvable:$true] %s226_s5 }
  0x28   : > { %s1246_s30 = scalar_lea.hbm %s1496_s1, %s1239_s21  ;;  %s922_s24 = scalar_lea.hbm %s1496_s1, 512 }
  0x29   : > { %s917_s8 = scalar_lea.hbm %s1246_s30, 128  ;;  %p923_p6 = scmp.lt.u32.totalorder %s1246_s30, %s1496_s1 }
  0x2a   : > { %p918_p2 = scmp.ne.s32.totalorder %s1246_s30, %s917_s8  ;;  %p924_p7 = scmp.lt.u32.totalorder %s922_s24, %s917_s8 }
  0x2b   : > { %p926_p11 = scmp.lt.u32.totalorder %s917_s8, %s1246_s30 }
  0x2c   : > { %p920_p4 = pnand %p1258_p3, %p918_p2  ;;  %p925_p10 = por %p924_p7, %p923_p6 }
  0x2e   : > { %p921_p5 = pneg %p920_p4  ;;  %p927_p13 = por %p926_p11, %p925_p10 }
  0x30   : > { %p928_p1 = pnand %p927_p13, %p921_p5 }
  0x32   : > { %931 = shalt.err (!%p928_p1)
}
  0x33   : > { %s932_s25 = scalar_lea.vmem %s1249_s5, 128  ;;  %s1111_s11 = smov [#allocation8]  }
  0x34   : > { %p933_p2 = scmp.ne.s32.totalorder %s1249_s5, %s932_s25  ;;  %s937_s29 = sshll.u32 %s1111_s11, 4  ;;  %s938_s29 = int_to_ptr.vmem [resolvable:$false] %s937_s29 }
  0x35   : > { %s939_s22 = scalar_lea.vmem %s938_s29, 256  ;;  %p940_p9 = scmp.lt.s32.totalorder %s1249_s5, %s938_s29 }
  0x36   : > { %p935_p4 = pnand %p933_p2, %p1258_p3  ;;  %p941_p8 = scmp.lt.s32.totalorder %s939_s22, %s932_s25 }
  0x38   : > { %p936_p12 = pneg %p935_p4  ;;  %p942_p6 = por %p941_p8, %p940_p9 }
  0x3a   : > { %p943_p7 = pnand %p942_p6, %p936_p12 }
  0x3c   : > { %946 = shalt.err (!%p943_p7)
}
  0x3d   : > { %s1479_s8 = smov 64   ;;  %s1481_s24 = smov 4  }
  0x3e   : > { %818 = dma.hbm_to_vmem [thread:$0]  (!%p1235_p0), %s1246_s30, 128, %s1249_s5, %s1252_s23, %s1479_s8, %s1479_s8, %s1481_s24  }
  0x3f   : > { %p259_p8 = scmp.lt.s32.totalorder %s1109_s19, 5  ;;  %p1498_p9 = scmp.ge.s32.totalorder %s1109_s19, 1 }
  0x40   : > { %s1500_s0 = sld [smem:[#allocation19_spill]]  ;;  %s190_s22 = scalar_lea.vmem [#allocation5], %s1229_s7 }
  0x41   : > { %p1288_p12 = pnand %p1498_p9, %p259_p8  ;;  %s201_s1 = sshll.u32 %s190_s22, 4  ;;  %s1299_s1 = int_to_ptr.vmem [resolvable:$true] %s201_s1 }
  0x42   : > { %s1501_s5 = sand.u32 1, %s1089_s14  }
  0x43   : > { %s1499_s26 = scalar_select %p1288_p12, 1, 0 }
  0x44   : > { %s1303_s30 = scalar_lea.sflag [#allocation6], %s1501_s5 }
  0x46   : > { %s1296_s29 = scalar_lea.hbm %s1500_s0, %s1239_s21  ;;  %s952_s11 = scalar_lea.hbm %s1500_s0, 512 }
  0x47   : > { %s947_s8 = scalar_lea.hbm %s1296_s29, 128  ;;  %p953_p11 = scmp.lt.u32.totalorder %s1296_s29, %s1500_s0 }
  0x48   : > { %p948_p1 = scmp.ne.s32.totalorder %s1296_s29, %s947_s8  ;;  %p954_p13 = scmp.lt.u32.totalorder %s952_s11, %s947_s8 }
  0x49   : > { %p956_p4 = scmp.lt.u32.totalorder %s947_s8, %s1296_s29 }
  0x4a   : > { %p950_p5 = pnand %p948_p1, %p1258_p3  ;;  %p955_p2 = por %p954_p13, %p953_p11 }
  0x4c   : > { %p951_p10 = pneg %p950_p5  ;;  %p957_p6 = por %p956_p4, %p955_p2 }
  0x4e   : > { %p958_p7 = pnand %p957_p6, %p951_p10 }
  0x50   : > { %961 = shalt.err (!%p958_p7)
}
  0x51   : > { %s962_s22 = scalar_lea.vmem %s1299_s1, 128  ;;  %s1114_s24 = smov [#allocation5]  }
  0x52   : > { %p963_p8 = scmp.ne.s32.totalorder %s1299_s1, %s962_s22  ;;  %s967_s5 = sshll.u32 %s1114_s24, 4  ;;  %s968_s5 = int_to_ptr.vmem [resolvable:$false] %s967_s5 }
  0x53   : > { %s969_s17 = scalar_lea.vmem %s968_s5, 256  ;;  %p970_p5 = scmp.lt.s32.totalorder %s1299_s1, %s968_s5 }
  0x54   : > { %p965_p9 = pnand %p963_p8, %p1258_p3  ;;  %p971_p12 = scmp.lt.s32.totalorder %s969_s17, %s962_s22 }
  0x56   : > { %p966_p1 = pneg %p965_p9  ;;  %p972_p11 = por %p971_p12, %p970_p5 }
  0x58   : > { %p973_p13 = pnand %p972_p11, %p966_p1 }
  0x5a   : > { %976 = shalt.err (!%p973_p13)
}
  0x5b   : > { %s1502_s18 = smov 4   ;;  %s1503_s8 = smov 64  }
  0x5c   : > { %815 = dma.hbm_to_vmem [thread:$0]  (!%p1235_p0), %s1296_s29, 128, %s1299_s1, %s1303_s30, %s1503_s8, %s1503_s8, %s1502_s18  }
  0x5d   : > { %s1334_s24 = scalar_lea.hbm %s1472_s2, %s1239_s21  ;;  %s240_s22 = scalar_lea.vmem [#allocation10], %s1229_s7 }
  0x5e   : > { %s251_s5 = sshll.u32 %s240_s22, 4  ;;  %s977_s17 = scalar_lea.hbm %s1334_s24, 128  ;;  %s1337_s5 = int_to_ptr.vmem [resolvable:$true] %s251_s5 }
  0x5f   : > { %p978_p12 = scmp.ne.s32.totalorder %s1334_s24, %s977_s17  ;;  %s982_s29 = scalar_lea.hbm %s1472_s2, 512 }
  0x60   : > { %p983_p4 = scmp.lt.u32.totalorder %s1334_s24, %s1472_s2  ;;  %p984_p6 = scmp.lt.u32.totalorder %s982_s29, %s977_s17 }
  0x61   : > { %p980_p10 = pnand %p978_p12, %p1258_p3  ;;  %p986_p8 = scmp.lt.u32.totalorder %s977_s17, %s1334_s24 }
  0x62   : > { %p985_p7 = por %p984_p6, %p983_p4 }
  0x63   : > { %p981_p2 = pneg %p980_p10 }
  0x64   : > { %p987_p9 = por %p986_p8, %p985_p7 }
  0x66   : > { %p988_p1 = pnand %p987_p9, %p981_p2 }
  0x68   : > { %991 = shalt.err (!%p988_p1)
}
  0x69   : > { %s992_s7 = scalar_lea.vmem %s1337_s5, 128  ;;  %s1115_s0 = smov [#allocation10]  }
  0x6a   : > { %p993_p5 = scmp.ne.s32.totalorder %s1337_s5, %s992_s7  ;;  %s997_s25 = sshll.u32 %s1115_s0, 4  ;;  %s998_s25 = int_to_ptr.vmem [resolvable:$false] %s997_s25 }
  0x6b   : > { %s999_s11 = scalar_lea.vmem %s998_s25, 256  ;;  %p1000_p12 = scmp.lt.s32.totalorder %s1337_s5, %s998_s25 }
  0x6c   : > { %p995_p11 = pnand %p993_p5, %p1258_p3  ;;  %p1001_p10 = scmp.lt.s32.totalorder %s999_s11, %s992_s7 }
  0x6e   : > { %p996_p13 = pneg %p995_p11  ;;  %p1002_p4 = por %p1001_p10, %p1000_p12 }
  0x70   : > { %p1003_p6 = pnand %p1002_p4, %p996_p13 }
  0x72   : > { %1006 = shalt.err (!%p1003_p6)
}
  0x73   : > { %821 = dma.hbm_to_vmem [thread:$0]  (!%p1235_p0), %s1334_s24, 128, %s1337_s5, %s1252_s23, %s1503_s8, %s1503_s8, %s1502_s18  }
  0x74   : > { %p1504_p3 = scmp.ne.s32.totalorder %s1499_s26, 0 }
  0x75   : > { %s1367_s9 = sand.u32 (!%p1504_p3), 1, %s1085_s13   ;;  %p1505_p2 = scmp.ne.s32.totalorder (!%p1504_p3), %s1492_s27, 0 }
  0x76   : > { %263 = sbr.rel (%p1504_p3) target bundleno = 960 (0x3c0), region = 32  ;;  %s1370_s22 = sshll.u32 (!%p1504_p3), %s1367_s9, 3 }
  0x77   : > { %s266_s10 = scalar_lea.sflag (!%p1504_p3), [#allocation6], %s1367_s9  ;;  %s269_s17 = scalar_lea.vmem (!%p1504_p3), [#allocation5], %s1370_s22 }
  0x7d   : > { %1068 = dma.done.wait (%p1505_p2), %s266_s10, 128  }
  0x7e   : > { %1070 = vsyncadd (%p1505_p2), %s266_s10, 4294967168  ;;  %s274_s23 = sand.u32 1, %s1184_s20   ;;  %s278_s18 = scalar_lea.vmem [#allocation8], %s1370_s22 }
  0x7f   : > { %s275_s26 = scalar_lea.sflag [#allocation9], %s274_s23 }
  0x80   : > { %1072 = dma.done.wait (%p1505_p2), %s275_s26, 256  }
  0x81   : > { %1074 = vsyncadd (%p1505_p2), %s275_s26, 4294967040  ;;  %vm334_vm0 = vcmask 523264   ;;  %v1116_v0 = vmov 0.0   ;;  %vm1117_vm1 = vmmov 0   ;;  %v902_v1 = vld [vmem:[%s278_s18] sm:$0xff]   ;;  %v903_v3 = vld [vmem:[%s269_s17] sm:$0xff]   ;;  %v408_v5 = vlaneseq }
  0x82   : > { %792 = vmatprep.subr.bf16.mxu0 %v1116_v0  ;;  %335 = vst.msk [vmem:[#allocation4] sm:$0xff] %vm334_vm0, %v1116_v0  ;;  %336 = vst.msk [vmem:[#allocation4 + $0x8] sm:$0xff] %vm334_vm0, %v1116_v0  ;;  %794 = vmatprep.mubr.msk.bf16.mxu0 %vm1117_vm1, %v1116_v0  ;;  %v363_v2 = vsel %vm334_vm0, %v902_v1, 0  ;;  %vm329_vm2 = vcmask 7168   ;;  %v1118_v4 = vmov -1e+30  }
  0x83   : > { %798 = vmatprep.subr.bf16.mxu1 %v1116_v0  ;;  %800 = vmatprep.mubr.msk.bf16.mxu1 %vm1117_vm1, %v1116_v0  ;;  %330 = vst.msk [vmem:[#allocation2] sm:$0xff] %vm329_vm2, %v1118_v4  ;;  %331 = vst.msk [vmem:[#allocation2 + $0x8] sm:$0xff] %vm329_vm2, %v1118_v4  ;;  %v409_v6 = vshrl.u32 %v408_v5, 7  ;;  %v415_v7 = vand.u32 127, %v408_v5  ;;  %vm424_vm4 = vcmask 130048   ;;  %v1119_v19 = vmov 0  }
  0x84   : > { %793 = vmatpush3.bf16.xpose.msra.mxu0 %v363_v2  ;;  %332 = vst.msk [vmem:[#allocation3] sm:$0xff] %vm329_vm2, %v1116_v0  ;;  %333 = vst.msk [vmem:[#allocation3 + $0x8] sm:$0xff] %vm329_vm2, %v1116_v0  ;;  %900 = vset.pattern.permute.xlu1 %v1119_v19  ;;  %s287_s20 = scalar_lea.vmem [#allocation10], %s1370_s22  ;;  %s781_s27 = sshll.u32 %s1093_s15, 1  ;;  %vm578_vm8 = vcmask 519168  }
  0x85   : > { %v410_v8 = vadd.s32 8, %v409_v6  ;;  %vm418_vm3 = vcmp.le.s32.totalorder %v415_v7, %v409_v6  ;;  %901 = vset.pattern.permute.xlu0 %v1119_v19  ;;  %v904_v28 = vld [vmem:[%s287_s20] sm:$0xff]   ;;  %s782_s8 = sshll.u32 %s1097_s16, 2  ;;  %s319_s1 = scalar_lea.vmem [#allocation11], %s1370_s22 }
  0x86   : > { %799 = vmatpush3.bf16.msra.mxu1 %v904_v28  ;;  %s596_s24 = sadd.s32 %s782_s8, %s781_s27  ;;  %s599_s29 = sshll.u32 %s319_s1, 4  ;;  %s1416_s29 = int_to_ptr.vmem [resolvable:$true] %s599_s29 }
  0x87   : > { %vm419_vm5 = vcmp.le.s32.totalorder %v415_v7, %v410_v8  ;;  %s783_s5 = sshll.u32 %s596_s24, 6  ;;  %s582_s16 = scalar_lea.sflag [#allocation7], %s1367_s9 }
  0x88   : > { %s1414_s15 = scalar_lea.hbm %s1473_s3, %s783_s5  ;;  %s1007_s7 = scalar_lea.vmem %s1416_s29, 128 }
  0x89   : > { %v472_v58 = vld [vmem:[#allocation4] sm:$0xff]  ;;  %v473_v60 = vld [vmem:[#allocation4 + $0x8] sm:$0xff]  ;;  %p1008_p0 = scmp.ne.s32.totalorder %s1416_s29, %s1007_s7  ;;  %p1506_p7 = scmp.ne.s32.totalorder %s1493_s28, 0 }
  0x8a   : > { %v422_v20 = vld [vmem:[#allocation2] sm:$0xff]  ;;  %v423_v23 = vld [vmem:[#allocation2 + $0x8] sm:$0xff]  ;;  %s1120_s0 = smov [#allocation11]  }
  0x8b   : > { %795 = vmatmul.mubr.msk.bf16.vlgmr.msra.gmra.mrb[0].mxu0 %vm334_vm0, %v903_v3  ;;  %v457_v46 = vld [vmem:[#allocation3] sm:$0xff]  ;;  %v458_v49 = vld [vmem:[#allocation3 + $0x8] sm:$0xff]  ;;  %p1009_p8 = pnand %p1008_p0, %p1506_p7  ;;  %s1011_s25 = sshll.u32 %s1120_s0, 4  ;;  %s1012_s25 = int_to_ptr.vmem [resolvable:$false] %s1011_s25 }
  0x8c   : > { %s1013_s11 = scalar_lea.vmem %s1012_s25, 256  ;;  %p1014_p1 = scmp.lt.s32.totalorder %s1416_s29, %s1012_s25 }
  0x8d   : > { %p1010_p9 = pneg %p1009_p8  ;;  %p1015_p5 = scmp.lt.s32.totalorder %s1013_s11, %s1007_s7 }
  0x8f   : > { %p1016_p11 = por %p1015_p5, %p1014_p1 }
  0x91   : > { %p1017_p13 = pnand %p1016_p11, %p1010_p9 }
 0x15e   : > { %v399_v9 = vpop.f32.mrb[0].mxu0 }
 0x15f   : > { %v406_v10 = vmul.f32 0.125, %v399_v9  ;;  %v796_v11 = vpop.f32.mrb[1].mxu0 }
 0x160   : > { %v402_v12 = vpop.f32.mrb[2].mxu0 }
 0x161   : > { %v407_v13 = vmul.f32 0.125, %v402_v12  ;;  %v797_v14 = vpop.f32.mrb[3].mxu0  ;;  %v420_v15 = vsel %vm418_vm3, %v406_v10, -1e+30 }
 0x162   : > { %v425_v16 = vsel %vm424_vm4, %v420_v15, -inf }
 0x163   : > { %426 = vmax.xlane.f32.xlu0 %v425_v16  ;;  %v421_v17 = vsel %vm419_vm5, %v407_v13, -1e+30 }
 0x164   : > { %v428_v18 = vsel %vm424_vm4, %v421_v17, -inf }
 0x167   : > { %429 = vmax.xlane.f32.xlu0 %v428_v18 }
 0x1f0   : > { %v427_v21 = vpop.xlane.xlu0 %426 }
 0x1f1   : > { %v431_v22 = vmax.f32 %v422_v20, %v427_v21 }
 0x1f3   : > { %v433_v24 = vsub.f32 %v422_v20, %v431_v22  ;;  %543 = vst.msk [vmem:[#allocation2] sm:$0xff] %vm329_vm2, %v431_v22  ;;  %441 = vperm.xlu1 %900, %v431_v22  }
 0x1f4   : > { %v430_v25 = vpop.xlane.xlu0 %429 }
 0x1f5   : > { %v432_v26 = vmax.f32 %v423_v23, %v430_v25  ;;  %v435_v43 = vmul.f32 1.442695, %v433_v24 }
 0x1f7   : > { %v434_v27 = vsub.f32 %v423_v23, %v432_v26  ;;  %544 = vst.msk [vmem:[#allocation2 + $0x8] sm:$0xff] %vm329_vm2, %v432_v26  ;;  %446 = vperm.xlu1 %900, %v432_v26  }
 0x1f9   : > { %v437_v42 = vmul.f32 1.442695, %v434_v27 }
 0x272   : > { %v442_v29 = vpop.permute.xlu1 %441 }
 0x273   : > { %v449_v30 = vsub.f32 %v420_v15, %v442_v29 }
 0x275   : > { %v451_v31 = vmul.f32 1.442695, %v449_v30 }
 0x276   : > { %v447_v32 = vpop.permute.xlu1 %446 }
 0x277   : > { %905 = vpow2.f32 %v451_v31  ;;  %v450_v33 = vsub.f32 %v421_v17, %v447_v32 }
 0x279   : > { %v453_v34 = vmul.f32 1.442695, %v450_v33 }
 0x27b   : > { %907 = vpow2.f32 %v453_v34 }
 0x27c   : > { %909 = vpow2.f32 %v437_v42 }
 0x27d   : > { %911 = vpow2.f32 %v435_v43 }
 0x281   : > { %v906_v35 = vpop.eup %905 }
 0x282   : > { %v455_v36 = vsel %vm418_vm3, %v906_v35, 0.0 }
 0x283   : > { %v461_v37 = vsel %vm424_vm4, %v455_v36, 0.0 }
 0x284   : > { %462 = vadd.xlane.f32.xlu0 %v461_v37 }
 0x285   : > { %v908_v38 = vpop.eup %907 }
 0x286   : > { %v456_v39 = vsel %vm419_vm5, %v908_v38, 0.0  ;;  %v910_v44 = vpop.eup %909 }
 0x287   : > { %v464_v40 = vsel %vm424_vm4, %v456_v39, 0.0  ;;  %v486_v41 = vpack.c.bf16 %v456_v39, %v455_v36  ;;  %v912_v45 = vpop.eup %911  ;;  %v460_v51 = vmul.f32 %v910_v44, %v458_v49 }
 0x288   : > { %465 = vadd.xlane.f32.xlu1 %v464_v40  ;;  %v459_v47 = vmul.f32 %v912_v45, %v457_v46 }
 0x289   : > { %801 = vmatmul.mubr.msk.bf16.vlgmr.msra.gmra.mrb[0].mxu1 %vm424_vm4, %v486_v41 }
 0x299   : > { %481 = vperm.xlu1 %900, %v910_v44  }
 0x29a   : > { %476 = vperm.xlu0 %901, %v912_v45  }
 0x311   : > { %v463_v48 = vpop.xlane.xlu0 %462 }
 0x312   : > { %v467_v50 = vadd.f32 %v463_v48, %v459_v47 }
 0x314   : > { %470 = vst.msk [vmem:[#allocation3] sm:$0xff] %vm329_vm2, %v467_v50 }
 0x315   : > { %v466_v52 = vpop.xlane.xlu1 %465 }
 0x316   : > { %v468_v53 = vadd.f32 %v466_v52, %v460_v51 }
 0x318   : > { %471 = vst.msk [vmem:[#allocation3 + $0x8] sm:$0xff] %vm329_vm2, %v468_v53 }
 0x319   : > { %v477_v59 = vpop.permute.xlu0 %476  ;;  %v482_v61 = vpop.permute.xlu1 %481 }
 0x31a   : > { %v484_v62 = vmul.f32 %v477_v59, %v472_v58  ;;  %v485_v0 = vmul.f32 %v482_v61, %v473_v60 }
 0x31b   : > { %v548_v54 = vld [vmem:[#allocation3] sm:$0xff] }
 0x31c   : > { %vm550_vm6 = vcmp.le.f32.partialorder %v548_v54, 0.0 }
 0x31d   : > { %v552_v55 = vsel %vm550_vm6, 1.0, %v548_v54 }
 0x31e   : > { %558 = vperm.xlu0 %901, %v552_v55  }
 0x31f   : > { %v549_v56 = vld [vmem:[#allocation3 + $0x8] sm:$0xff] }
 0x320   : > { %vm551_vm7 = vcmp.le.f32.partialorder %v549_v56, 0.0 }
 0x321   : > { %v553_v57 = vsel %vm551_vm7, 1.0, %v549_v56 }
 0x322   : > { %563 = vperm.xlu0 %901, %v553_v57  }
 0x35c   : > { %v532_v63 = vpop.f32.mrb[0].mxu1 }
 0x35d   : > { %v539_v1 = vadd.f32 %v532_v63, %v484_v62  ;;  %v802_v2 = vpop.f32.mrb[1].mxu1 }
 0x35e   : > { %v535_v3 = vpop.f32.mrb[2].mxu1 }
 0x35f   : > { %541 = vst.msk [vmem:[#allocation4] sm:$0xff] %vm334_vm0, %v539_v1  ;;  %v540_v4 = vadd.f32 %v535_v3, %v485_v0  ;;  %v803_v5 = vpop.f32.mrb[3].mxu1 }
 0x361   : > { %542 = vst.msk [vmem:[#allocation4 + $0x8] sm:$0xff] %vm334_vm0, %v540_v4 }
 0x366   : > { %v554_v9 = vld [vmem:[#allocation4] sm:$0xff] }
 0x368   : > { %v555_v13 = vld [vmem:[#allocation4 + $0x8] sm:$0xff] }
 0x39d   : > { %v559_v6 = vpop.permute.xlu0 %558 }
 0x39e   : > { %913 = vrcp.f32 %v559_v6 }
 0x3a1   : > { %v564_v7 = vpop.permute.xlu0 %563 }
 0x3a2   : > { %915 = vrcp.f32 %v564_v7 }
 0x3a8   : > { %v914_v8 = vpop.eup %913 }
 0x3a9   : > { %v567_v10 = vmul.f32 %v914_v8, %v554_v9 }
 0x3ab   : > { %v786_v11 = vpack.c.bf16 %v567_v10, %v567_v10 }
 0x3ac   : > { %v916_v12 = vpop.eup %915 }
 0x3ad   : > { %v569_v14 = vmul.f32 %v916_v12, %v555_v13  ;;  %579 = vst.msk [vmem:[%s319_s1] sm:$0xf] %vm578_vm8, %v786_v11 }
 0x3af   : > { %v787_v15 = vpack.c.bf16 %v569_v14, %v569_v14 }
 0x3b1   : > { %580 = vst.msk [vmem:[%s319_s1 + $0x4] sm:$0xf] %vm578_vm8, %v787_v15 }
 0x3b2   : > { %1020 = shalt.err (!%p1017_p13)
}
 0x3b3   : > { %s1021_s22 = scalar_lea.hbm %s1414_s15, 128  ;;  %s1025_s23 = scalar_lea.hbm %s1473_s3, 512 }
 0x3b4   : > { %p1022_p12 = scmp.ne.s32.totalorder %s1414_s15, %s1021_s22  ;;  %p1026_p6 = scmp.lt.u32.totalorder %s1414_s15, %s1473_s3 }
 0x3b5   : > { %p1027_p3 = scmp.lt.u32.totalorder %s1025_s23, %s1021_s22  ;;  %p1029_p0 = scmp.lt.u32.totalorder %s1021_s22, %s1414_s15 }
 0x3b6   : > { %p1023_p10 = pnand %p1022_p12, %p1506_p7 }
 0x3b7   : > { %p1028_p2 = por %p1027_p3, %p1026_p6 }
 0x3b8   : > { %p1024_p4 = pneg %p1023_p10 }
 0x3b9   : > { %p1030_p8 = por %p1029_p0, %p1028_p2 }
 0x3bb   : > { %p1031_p9 = pnand %p1030_p8, %p1024_p4 }
 0x3bd   : > { %1034 = shalt.err (!%p1031_p9)
}
 0x3be   : > { %s1121_s20 = smov 64   ;;  %s1122_s27 = smov 4  }
 0x3bf   : > { %810 = dma.vmem_to_hbm [thread:$0]  (%p1506_p7), %s1416_s29, 128, %s1414_s15, %s582_s16, %s1121_s20, %s1121_s20, %s1122_s27  }
 0x3c0 PF: > { %p827_p1 = scmp.ge.s32.totalorder %s1109_s19, 2  ;;  %s614_s8 = sand.u32 1, %s1081_s12  }
 0x3c1   : > { %p1507_p5 = scmp.ne.s32.totalorder %s1494_s4, 0  ;;  %s615_s24 = scalar_lea.sflag [#allocation7], %s614_s8 }
 0x3c3   : > { %p823_p11 = pnand %p827_p1, %p1507_p5 }
 0x3c5   : > { %1076 = dma.done.wait (!%p823_p11), %s615_s24, 128  }
 0x3c6   : > { %1078 = vsyncadd (!%p823_p11), %s615_s24, 4294967168  ;;  %s22_s19 = sadd.s32 1, %s1109_s19   ;;  %s1508_s15 = sld [smem:[#allocation15_spill]] }
 0x3c7   : > { %p19_p13 = scmp.ge.s32.totalorder %s22_s19, 6   ;;  %s1509_s16 = sld [smem:[#allocation16_spill]] }
 0x3c8   : > { %s1510_s17 = sld [smem:[#allocation17_spill]]  ;;  %s1511_s18 = sld [smem:[#allocation18_spill]] }
 0x3c9   : > { %s1512_s12 = smov %s1085_s13  ;;  %s1513_s13 = smov %s1089_s14 }
 0x3ca   : > { %s1514_s14 = smov %s1225_s6  ;;  %21 = sbr.rel (!%p19_p13) target bundleno = 12 (0xc), region = 113 }
 0x3d1   :  { %620 = vsyncpa [#allocation6], 1 }
 0x3d2   :  { %622 = vsyncpa [#allocation6 + $0x1], 1 }
 0x3d3   :  { %623 = vsyncpa [#allocation9], 1 }
 0x3d4   :  { %625 = vsyncpa [#allocation9 + $0x1], 1 }
 0x3d5   :  { %626 = vsyncpa [#allocation7], 1 }
 0x3d6   :  { %628 = vsyncpa [#allocation7 + $0x1], 1 }

// kernel: encoder_block_forward.6
= control target key start
LH: loop header
LB: loop body
LE: loop exit
PB: predicated region body
PF: predicated region fallthrough
CT: control target
= control target key end

     0   :  { %10 = vsyncpa [#allocation4], 0  ;;  %s1270_s0 = inlined_call_operand.hbm [shape: f32[32,128], index: 0, kind: input, shape index: {}]   ;;  %s1271_s1 = inlined_call_operand.hbm [shape: f32[1,128], index: 1, kind: input, shape index: {}]   ;;  %s1272_s2 = inlined_call_operand.hbm [shape: f32[1,128], index: 2, kind: input, shape index: {}]   ;;  %s1273_s3 = inlined_call_operand.hbm [shape: bf16[128,512], index: 3, kind: input, shape index: {}]   ;;  %s1274_s4 = inlined_call_operand.hbm [shape: f32[1,512], index: 4, kind: input, shape index: {}]   ;;  %s1275_s5 = inlined_call_operand.hbm [shape: bf16[32,512], index: 5, kind: output, shape index: {}]  }
   0x1   :  { %11 = vsyncpa [#allocation7], 0 }
   0x2   :  { %12 = vsyncpa [#allocation10], 0 }
   0x3   :  { %13 = vsyncpa [#allocation5], 0  ;;  %s993_s18 = smov [#allocation6]   ;;  %s994_s20 = smov [#allocation9]  }
   0x4   :  { %s32_s19 = sshll.u32 %s993_s18, 4  ;;  %s51_s21 = sshll.u32 %s994_s20, 4  ;;  %s33_s19 = int_to_ptr.vmem [resolvable:$true] %s32_s19  ;;  %s1034_s21 = int_to_ptr.vmem [resolvable:$true] %s51_s21 }
   0x5   :  { %s853_s24 = scalar_lea.hbm %s1271_s1, 16 }
   0x6   :  { %p854_p0 = scmp.ne.s32.totalorder %s1271_s1, %s853_s24  ;;  %p857_p1 = scmp.lt.u32.totalorder %s853_s24, %s1271_s1 }
   0x8   :  { %p859_p2 = pnand %p857_p1, %p854_p0 }
   0xa   :  { %862 = shalt.err (!%p859_p2)
}
   0xb   :  { %s863_s29 = scalar_lea.vmem %s33_s19, 16  ;;  %s867_s30 = scalar_lea.vmem %s33_s19, 32 }
   0xc   :  { %p864_p3 = scmp.ne.s32.totalorder %s33_s19, %s863_s29  ;;  %p868_p4 = scmp.lt.s32.totalorder %s33_s19, %s33_s19 }
   0xd   :  { %p869_p5 = scmp.lt.s32.totalorder %s867_s30, %s863_s29 }
   0xf   :  { %p870_p6 = por %p869_p5, %p868_p4 }
  0x11   :  { %p871_p7 = pnand %p870_p6, %p864_p3 }
  0x13   :  { %874 = shalt.err (!%p871_p7)
}
  0x14   :  { %35 = dma.hbm_to_vmem [thread:$0]  %s1271_s1, 16, %s33_s19, [#allocation7]  }
  0x15   :  { %s875_s10 = scalar_lea.hbm %s1273_s3, 4096 }
  0x16   :  { %p876_p8 = scmp.ne.s32.totalorder %s1273_s3, %s875_s10  ;;  %p879_p9 = scmp.lt.u32.totalorder %s875_s10, %s1273_s3 }
  0x18   :  { %p881_p10 = pnand %p879_p9, %p876_p8 }
  0x1a   :  { %884 = shalt.err (!%p881_p10)
}
  0x1b   :  { %s885_s15 = scalar_lea.vmem %s1034_s21, 4096  ;;  %p890_p12 = scmp.lt.s32.totalorder %s1034_s21, %s1034_s21 }
  0x1c   :  { %p886_p11 = scmp.ne.s32.totalorder %s1034_s21, %s885_s15  ;;  %p891_p13 = scmp.lt.s32.totalorder %s885_s15, %s885_s15 }
  0x1e   :  { %p892_p0 = por %p891_p13, %p890_p12 }
  0x20   :  { %p893_p1 = pnand %p892_p0, %p886_p11 }
  0x22   :  { %896 = shalt.err (!%p893_p1)
}
  0x23   :  { %s995_s1 = smov 256   ;;  %s996_s16 = smov 16  }
  0x24   :  { %57 = dma.hbm_to_vmem [thread:$0]  %s1273_s3, 4096, %s1034_s21, [#allocation10], %s995_s1, %s995_s1, %s996_s16  }
  0x25   :  { %s997_s19 = smov [#allocation3]   ;;  %s897_s24 = scalar_lea.hbm %s1270_s0, 512 }
  0x26   :  { %s19_s20 = sshll.u32 %s997_s19, 4  ;;  %p898_p2 = scmp.ne.s32.totalorder %s1270_s0, %s897_s24  ;;  %s20_s20 = int_to_ptr.vmem [resolvable:$true] %s19_s20 }
  0x27   :  { %p901_p3 = scmp.lt.u32.totalorder %s897_s24, %s1270_s0 }
  0x29   :  { %p903_p4 = pnand %p901_p3, %p898_p2 }
  0x2b   :  { %906 = shalt.err (!%p903_p4)
}
  0x2c   :  { %s907_s29 = scalar_lea.vmem %s20_s20, 512  ;;  %p912_p6 = scmp.lt.s32.totalorder %s20_s20, %s20_s20 }
  0x2d   :  { %p908_p5 = scmp.ne.s32.totalorder %s20_s20, %s907_s29  ;;  %p913_p7 = scmp.lt.s32.totalorder %s907_s29, %s907_s29 }
  0x2f   :  { %p914_p8 = por %p913_p7, %p912_p6 }
  0x31   :  { %p915_p9 = pnand %p914_p8, %p908_p5 }
  0x33   :  { %918 = shalt.err (!%p915_p9)
}
  0x34   :  { %s998_s3 = smov 128   ;;  %s999_s21 = smov 8  }
  0x35   :  { %25 = dma.hbm_to_vmem [thread:$0]  %s1270_s0, 512, %s20_s20, [#allocation4], %s998_s3, %s998_s3, %s999_s21  }
  0x36   :  { %s1000_s7 = smov [#allocation8]   ;;  %s1001_s9 = smov [#allocation11]  }
  0x37   :  { %s42_s8 = sshll.u32 %s1000_s7, 4  ;;  %s64_s10 = sshll.u32 %s1001_s9, 4  ;;  %s43_s8 = int_to_ptr.vmem [resolvable:$true] %s42_s8  ;;  %s65_s10 = int_to_ptr.vmem [resolvable:$true] %s64_s10 }
  0x38   :  { %s919_s13 = scalar_lea.hbm %s1272_s2, 16 }
  0x39   :  { %p920_p10 = scmp.ne.s32.totalorder %s1272_s2, %s919_s13  ;;  %p923_p11 = scmp.lt.u32.totalorder %s919_s13, %s1272_s2 }
  0x3b   :  { %p925_p12 = pnand %p923_p11, %p920_p10 }
  0x3d   :  { %928 = shalt.err (!%p925_p12)
}
  0x3e   :  { %s929_s0 = scalar_lea.vmem %s43_s8, 16  ;;  %s933_s19 = scalar_lea.vmem %s43_s8, 32 }
  0x3f   :  { %p930_p13 = scmp.ne.s32.totalorder %s43_s8, %s929_s0  ;;  %p934_p0 = scmp.lt.s32.totalorder %s43_s8, %s43_s8 }
  0x40   :  { %p935_p1 = scmp.lt.s32.totalorder %s933_s19, %s929_s0 }
  0x42   :  { %p936_p2 = por %p935_p1, %p934_p0 }
  0x44   :  { %p937_p3 = pnand %p936_p2, %p930_p13 }
  0x46   :  { %940 = shalt.err (!%p937_p3)
}
  0x47   :  { %45 = dma.hbm_to_vmem [thread:$0]  %s1272_s2, 16, %s43_s8, [#allocation7]  }
  0x48   :  { %s941_s25 = scalar_lea.hbm %s1274_s4, 64 }
  0x49   :  { %p942_p4 = scmp.ne.s32.totalorder %s1274_s4, %s941_s25  ;;  %p945_p5 = scmp.lt.u32.totalorder %s941_s25, %s1274_s4 }
  0x4b   :  { %p947_p6 = pnand %p945_p5, %p942_p4 }
  0x4d   :  { %950 = shalt.err (!%p947_p6)
}
  0x4e   :  { %s951_s3 = scalar_lea.vmem %s65_s10, 64  ;;  %p956_p8 = scmp.lt.s32.totalorder %s65_s10, %s65_s10 }
  0x4f   :  { %p952_p7 = scmp.ne.s32.totalorder %s65_s10, %s951_s3  ;;  %p957_p9 = scmp.lt.s32.totalorder %s951_s3, %s951_s3 }
  0x51   :  { %p958_p10 = por %p957_p9, %p956_p8 }
  0x53   :  { %p959_p11 = pnand %p958_p10, %p952_p7 }
  0x55   :  { %962 = shalt.err (!%p959_p11)
}
  0x56   :  { %67 = dma.hbm_to_vmem [thread:$0]  %s1274_s4, 64, %s65_s10, [#allocation10]  }
  0x57   :  { %985 = dma.done.wait [#allocation4], 512  }
  0x58   :  { %986 = vsyncadd [#allocation4], 4294966784 }
  0x59   :  { %987 = dma.done.wait [#allocation7], 32  }
  0x5a   :  { %988 = vsyncadd [#allocation7], 4294967264 }
  0x5b   :  { %989 = dma.done.wait [#allocation10], 4160  }
  0x5c   :  { %990 = vsyncadd [#allocation10], 4294963136  ;;  %v88_v0 = vld [vmem:[#allocation3] sm:$0xff]  ;;  %v90_v1 = vld [vmem:[#allocation3 + $0x10] sm:$0xff]  ;;  %v1002_v50 = vmov 0   ;;  %s1003_s4 = smov [#allocation12]  }
  0x5d   :  { %v89_v2 = vld [vmem:[#allocation3 + $0x8] sm:$0xff]  ;;  %92 = vadd.xlane.f32.xlu0 %v88_v0  ;;  %96 = vadd.xlane.f32.xlu1 %v90_v1  ;;  %v91_v3 = vld [vmem:[#allocation3 + $0x18] sm:$0xff]  ;;  %v767_v5 = vld [vmem:[#allocation9 + $0xc] ss:$16 sps:$4 sm:$0xff]   ;;  %s690_s30 = sshll.u32 %s1003_s4, 4  ;;  %s691_s30 = int_to_ptr.vmem [resolvable:$true] %s690_s30 }
  0x5e   :  { %v765_v4 = vld [vmem:[#allocation9 + $0x4] ss:$16 sps:$4 sm:$0xff]   ;;  %v769_v6 = vld [vmem:[#allocation9] ss:$16 sps:$4 sm:$0xff]   ;;  %v770_v7 = vld [vmem:[#allocation9 + $0x8] ss:$16 sps:$4 sm:$0xff]   ;;  %432 = vmatprep.subr.bf16.mxu1 %v767_v5  ;;  %411 = vmatprep.mubr.bf16.mxu0 %v1002_v50  ;;  %p968_p13 = scmp.lt.s32.totalorder %s691_s30, %s691_s30 }
  0x5f   :  { %v771_v8 = vld [vmem:[#allocation9 + $0x24] ss:$16 sps:$4 sm:$0xff]   ;;  %v773_v9 = vld [vmem:[#allocation9 + $0x2c] ss:$16 sps:$4 sm:$0xff]   ;;  %379 = vmatprep.subr.bf16.mxu0 %v765_v4  ;;  %433 = vmatpush1.bf16.msra.mxu1 %v770_v7  ;;  %v775_v26 = vld [vmem:[#allocation9 + $0x20] ss:$16 sps:$4 sm:$0xff]  }
  0x60   :  { %380 = vmatpush1.bf16.msra.mxu0 %v769_v6  ;;  %434 = vmatprep.subr.bf16.mxu1 %v773_v9  ;;  %v776_v27 = vld [vmem:[#allocation9 + $0x28] ss:$16 sps:$4 sm:$0xff]   ;;  %v777_v28 = vld [vmem:[#allocation9 + $0x44] ss:$16 sps:$4 sm:$0xff]   ;;  %v779_v29 = vld [vmem:[#allocation9 + $0x4c] ss:$16 sps:$4 sm:$0xff]  }
  0x61   :  { %94 = vadd.xlane.f32.xlu0 %v89_v2  ;;  %98 = vadd.xlane.f32.xlu1 %v91_v3  ;;  %v781_v30 = vld [vmem:[#allocation9 + $0x40] ss:$16 sps:$4 sm:$0xff]   ;;  %v782_v31 = vld [vmem:[#allocation9 + $0x48] ss:$16 sps:$4 sm:$0xff]   ;;  %v783_v32 = vld [vmem:[#allocation9 + $0x64] ss:$16 sps:$4 sm:$0xff]  }
  0x62   :  { %381 = vmatprep.subr.bf16.mxu0 %v771_v8  ;;  %v785_v33 = vld [vmem:[#allocation9 + $0x6c] ss:$16 sps:$4 sm:$0xff]   ;;  %v787_v34 = vld [vmem:[#allocation9 + $0x60] ss:$16 sps:$4 sm:$0xff]   ;;  %v788_v35 = vld [vmem:[#allocation9 + $0x68] ss:$16 sps:$4 sm:$0xff]   ;;  %464 = vmatprep.mubr.bf16.mxu1 %v1002_v50 }
  0x63   :  { %435 = vmatpush1.bf16.msra.mxu1 %v776_v27  ;;  %v789_v36 = vld [vmem:[#allocation9 + $0x84] ss:$16 sps:$4 sm:$0xff]   ;;  %v791_v37 = vld [vmem:[#allocation9 + $0x8c] ss:$16 sps:$4 sm:$0xff]   ;;  %v793_v38 = vld [vmem:[#allocation9 + $0x80] ss:$16 sps:$4 sm:$0xff]  }
  0x64   :  { %382 = vmatpush1.bf16.msra.mxu0 %v775_v26  ;;  %436 = vmatprep.subr.bf16.mxu1 %v779_v29  ;;  %v794_v39 = vld [vmem:[#allocation9 + $0x88] ss:$16 sps:$4 sm:$0xff]   ;;  %v795_v40 = vld [vmem:[#allocation9 + $0xa4] ss:$16 sps:$4 sm:$0xff]   ;;  %v797_v41 = vld [vmem:[#allocation9 + $0xac] ss:$16 sps:$4 sm:$0xff]  }
  0x65   :  { %383 = vmatprep.subr.bf16.mxu0 %v777_v28  ;;  %v799_v42 = vld [vmem:[#allocation9 + $0xa0] ss:$16 sps:$4 sm:$0xff]   ;;  %v800_v43 = vld [vmem:[#allocation9 + $0xa8] ss:$16 sps:$4 sm:$0xff]   ;;  %v801_v44 = vld [vmem:[#allocation9 + $0xc4] ss:$16 sps:$4 sm:$0xff]  }
  0x66   :  { %v803_v45 = vld [vmem:[#allocation9 + $0xcc] ss:$16 sps:$4 sm:$0xff]   ;;  %v805_v46 = vld [vmem:[#allocation9 + $0xc0] ss:$16 sps:$4 sm:$0xff]   ;;  %v806_v47 = vld [vmem:[#allocation9 + $0xc8] ss:$16 sps:$4 sm:$0xff]  }
  0x67   :  { %437 = vmatpush1.bf16.msra.mxu1 %v782_v31  ;;  %v807_v48 = vld [vmem:[#allocation9 + $0xe4] ss:$16 sps:$4 sm:$0xff]   ;;  %v809_v49 = vld [vmem:[#allocation9 + $0xec] ss:$16 sps:$4 sm:$0xff]   ;;  %v811_v51 = vld [vmem:[#allocation9 + $0xe0] ss:$16 sps:$4 sm:$0xff]  }
  0x68   :  { %384 = vmatpush1.bf16.msra.mxu0 %v781_v30  ;;  %438 = vmatprep.subr.bf16.mxu1 %v785_v33  ;;  %v812_v52 = vld [vmem:[#allocation9 + $0xe8] ss:$16 sps:$4 sm:$0xff]   ;;  %v705_v8 = vld [vmem:[#allocation8] ss:$0 sm:$0xff]  ;;  %v197_v27 = vld [vmem:[#allocation11] sm:$0xf] }
  0x69   :  { %385 = vmatprep.subr.bf16.mxu0 %v783_v32  ;;  %s963_s6 = scalar_lea.vmem %s691_s30, 1024 }
  0x6a   :  { %p964_p12 = scmp.ne.s32.totalorder %s691_s30, %s963_s6  ;;  %p969_p0 = scmp.lt.s32.totalorder %s963_s6, %s963_s6 }
  0x6b   :  { %439 = vmatpush1.bf16.msra.mxu1 %v788_v35 }
  0x6c   :  { %386 = vmatpush1.bf16.msra.mxu0 %v787_v34  ;;  %440 = vmatprep.subr.bf16.mxu1 %v791_v37  ;;  %p970_p1 = por %p969_p0, %p968_p13 }
  0x6d   :  { %387 = vmatprep.subr.bf16.mxu0 %v789_v36 }
  0x6e   :  { %p971_p2 = pnand %p970_p1, %p964_p12 }
  0x6f   :  { %441 = vmatpush1.bf16.msra.mxu1 %v794_v39 }
  0x70   :  { %388 = vmatpush1.bf16.msra.mxu0 %v793_v38  ;;  %442 = vmatprep.subr.bf16.mxu1 %v797_v41 }
  0x71   :  { %389 = vmatprep.subr.bf16.mxu0 %v795_v40 }
  0x73   :  { %443 = vmatpush1.bf16.msra.mxu1 %v800_v43 }
  0x74   :  { %390 = vmatpush1.bf16.msra.mxu0 %v799_v42  ;;  %444 = vmatprep.subr.bf16.mxu1 %v803_v45 }
  0x75   :  { %391 = vmatprep.subr.bf16.mxu0 %v801_v44 }
  0x77   :  { %445 = vmatpush1.bf16.msra.mxu1 %v806_v47 }
  0x78   :  { %392 = vmatpush1.bf16.msra.mxu0 %v805_v46  ;;  %446 = vmatprep.subr.bf16.mxu1 %v809_v49 }
  0x79   :  { %393 = vmatprep.subr.bf16.mxu0 %v807_v48 }
  0x7b   :  { %447 = vmatpush1.bf16.msra.mxu1 %v812_v52 }
  0x7c   :  { %394 = vmatpush1.bf16.msra.mxu0 %v811_v51 }
  0xea   :  { %v93_v10 = vpop.xlane.xlu0 %92  ;;  %v97_v11 = vpop.xlane.xlu1 %96 }
  0xeb   :  { %v101_v12 = vmul.f32 0.0078125, %v93_v10  ;;  %v103_v13 = vmul.f32 0.0078125, %v97_v11 }
  0xed   :  { %v1104_v14 = vsub.f32 %v88_v0, %v101_v12  ;;  %v1106_v15 = vsub.f32 %v90_v1, %v103_v13 }
  0xee   :  { %v95_v16 = vpop.xlane.xlu0 %94  ;;  %v99_v17 = vpop.xlane.xlu1 %98 }
  0xef   :  { %v102_v18 = vmul.f32 0.0078125, %v95_v16  ;;  %v109_v19 = vmul.f32 %v1104_v14, %v1104_v14  ;;  %v104_v20 = vmul.f32 0.0078125, %v99_v17  ;;  %v111_v23 = vmul.f32 %v1106_v15, %v1106_v15 }
  0xf1   :  { %v1110_v21 = vsub.f32 %v89_v2, %v102_v18  ;;  %113 = vadd.xlane.f32.xlu0 %v109_v19  ;;  %v1112_v22 = vsub.f32 %v91_v3, %v104_v20  ;;  %v704_v3 = vld [vmem:[#allocation6] ss:$0 sm:$0xff] }
  0xf3   :  { %v110_v24 = vmul.f32 %v1110_v21, %v1110_v21  ;;  %v112_v25 = vmul.f32 %v1112_v22, %v1112_v22 }
  0xf5   :  { %117 = vadd.xlane.f32.xlu0 %v111_v23  ;;  %115 = vadd.xlane.f32.xlu1 %v110_v24  ;;  %v199_v23 = vlaneseq }
  0xf7   :  { %v200_v24 = vshrl.u32 %v199_v23, 7 }
  0xf9   :  { %119 = vadd.xlane.f32.xlu1 %v112_v25  ;;  %v201_v25 = vsub.s32 0, %v200_v24  ;;  %v209_v26 = vsub.s32 2, %v200_v24  ;;  %v213_v28 = vsub.s32 3, %v200_v24 }
  0xfb   :  { %v1126_v29 = vrot.slane %v197_v27, %v209_v26  ;;  %v1130_v31 = vrot.slane %v197_v27, %v213_v28 }
 0x17e   :  { %v114_v53 = vpop.xlane.xlu0 %113 }
 0x17f   :  { %v121_v54 = vmul.f32 0.0078125, %v114_v53 }
 0x181   :  { %v125_v55 = vadd.f32 1e-05, %v121_v54 }
 0x182   :  { %v116_v56 = vpop.xlane.xlu1 %115  ;;  %v118_v57 = vpop.xlane.xlu0 %117 }
 0x183   :  { %813 = vrsqrt.f32 %v125_v55  ;;  %v122_v58 = vmul.f32 0.0078125, %v116_v56  ;;  %v123_v59 = vmul.f32 0.0078125, %v118_v57 }
 0x185   :  { %v126_v60 = vadd.f32 1e-05, %v122_v58  ;;  %v127_v61 = vadd.f32 1e-05, %v123_v59 }
 0x186   :  { %v120_v62 = vpop.xlane.xlu1 %119 }
 0x187   :  { %815 = vrsqrt.f32 %v126_v60  ;;  %v124_v63 = vmul.f32 0.0078125, %v120_v62 }
 0x188   :  { %817 = vrsqrt.f32 %v127_v61 }
 0x189   :  { %v128_v0 = vadd.f32 1e-05, %v124_v63 }
 0x18b   :  { %819 = vrsqrt.f32 %v128_v0 }
 0x18d   :  { %v814_v1 = vpop.eup %813 }
 0x18e   :  { %v133_v2 = vmul.f32 %v814_v1, %v1104_v14 }
 0x190   :  { %v144_v6 = vmul.f32 %v704_v3, %v133_v2 }
 0x191   :  { %v816_v4 = vpop.eup %815 }
 0x192   :  { %v134_v5 = vmul.f32 %v816_v4, %v1110_v21  ;;  %v818_v7 = vpop.eup %817  ;;  %v155_v11 = vadd.f32 %v705_v8, %v144_v6 }
 0x193   :  { %v135_v13 = vmul.f32 %v818_v7, %v1106_v15  ;;  %v205_v15 = vsub.s32 1, %v200_v24 }
 0x194   :  { %v145_v9 = vmul.f32 %v704_v3, %v134_v5 }
 0x195   :  { %v820_v10 = vpop.eup %819  ;;  %v146_v14 = vmul.f32 %v704_v3, %v135_v13  ;;  %v1128_v30 = vrot.slane %v197_v27, %v205_v15 }
 0x196   :  { %v156_v12 = vadd.f32 %v705_v8, %v145_v9  ;;  %v136_v16 = vmul.f32 %v820_v10, %v1112_v22  ;;  %v1124_v22 = vrot.slane %v197_v27, %v201_v25 }
 0x197   :  { %v157_v20 = vadd.f32 %v705_v8, %v146_v14 }
 0x198   :  { %v159_v17 = vpack.c.bf16 %v156_v12, %v155_v11  ;;  %v147_v18 = vmul.f32 %v704_v3, %v136_v16 }
 0x19a   :  { %412 = vmatmul.mubr.bf16.vlgmr.msra.gmra.mrb[0].mxu0 %v159_v17  ;;  %465 = vmatmul.mubr.bf16.vlgmr.msra.gmra.mrb[0].mxu1 %v159_v17  ;;  %v158_v19 = vadd.f32 %v705_v8, %v147_v18 }
 0x19b   :  { %421 = vmatprep.mubr.bf16.mxu0 %v1002_v50  ;;  %474 = vmatprep.mubr.bf16.mxu1 %v1002_v50 }
 0x19c   :  { %v160_v21 = vpack.c.bf16 %v158_v19, %v157_v20 }
 0x1a2   :  { %422 = vmatmul.mubr.bf16.gmra.mrb[4].mxu0 %v160_v21  ;;  %475 = vmatmul.mubr.bf16.gmra.mrb[4].mxu1 %v160_v21 }
 0x26d   :  { %v413_v32 = vpop.f32.mrb[0].mxu0  ;;  %v466_v33 = vpop.f32.mrb[0].mxu1 }
 0x26e   :  { %v1133_v34 = vadd.f32 %v413_v32, %v1124_v22  ;;  %v1136_v35 = vadd.f32 %v466_v33, %v1126_v29  ;;  %v415_v36 = vpop.f32.mrb[1].mxu0  ;;  %v468_v37 = vpop.f32.mrb[1].mxu1 }
 0x26f   :  { %v1139_v38 = vadd.f32 %v415_v36, %v1128_v30  ;;  %v1142_v39 = vadd.f32 %v468_v37, %v1130_v31  ;;  %v417_v40 = vpop.f32.mrb[2].mxu0  ;;  %v470_v41 = vpop.f32.mrb[2].mxu1 }
 0x270   :  { %v501_v42 = vmul.f32 0.044715, %v1133_v34  ;;  %v503_v43 = vmul.f32 0.044715, %v1136_v35  ;;  %v1151_v48 = vadd.f32 %v417_v40, %v1124_v22  ;;  %v1154_v49 = vadd.f32 %v470_v41, %v1126_v29  ;;  %v419_v50 = vpop.f32.mrb[3].mxu0  ;;  %v472_v51 = vpop.f32.mrb[3].mxu1 }
 0x271   :  { %v502_v44 = vmul.f32 0.044715, %v1139_v38  ;;  %v504_v45 = vmul.f32 0.044715, %v1142_v39  ;;  %v1159_v54 = vadd.f32 %v419_v50, %v1128_v30  ;;  %v1171_v2 = vadd.f32 %v472_v51, %v1130_v31 }
 0x272   :  { %v517_v46 = vmul.f32 %v501_v42, %v1133_v34  ;;  %v519_v47 = vmul.f32 %v503_v43, %v1136_v35  ;;  %v505_v57 = vmul.f32 0.044715, %v1151_v48  ;;  %v507_v60 = vmul.f32 0.044715, %v1154_v49 }
 0x273   :  { %v518_v52 = vmul.f32 %v502_v44, %v1139_v38  ;;  %v520_v53 = vmul.f32 %v504_v45, %v1142_v39  ;;  %v506_v8 = vmul.f32 0.044715, %v1159_v54  ;;  %v508_v23 = vmul.f32 0.044715, %v1171_v2 }
 0x274   :  { %v533_v55 = vmul.f32 %v517_v46, %v1133_v34  ;;  %v535_v56 = vmul.f32 %v519_v47, %v1136_v35  ;;  %v521_v1 = vmul.f32 %v505_v57, %v1151_v48  ;;  %v523_v7 = vmul.f32 %v507_v60, %v1154_v49 }
 0x275   :  { %v534_v58 = vmul.f32 %v518_v52, %v1139_v38  ;;  %v536_v59 = vmul.f32 %v520_v53, %v1142_v39  ;;  %v423_v61 = vpop.f32.mrb[4].mxu0  ;;  %v476_v62 = vpop.f32.mrb[4].mxu1  ;;  %v522_v19 = vmul.f32 %v506_v8, %v1159_v54  ;;  %v524_v28 = vmul.f32 %v508_v23, %v1171_v2 }
 0x276   :  { %v549_v63 = vadd.f32 %v533_v55, %v1133_v34  ;;  %v551_v0 = vadd.f32 %v535_v56, %v1136_v35  ;;  %v425_v3 = vpop.f32.mrb[5].mxu0  ;;  %v478_v4 = vpop.f32.mrb[5].mxu1  ;;  %v537_v13 = vmul.f32 %v521_v1, %v1151_v48  ;;  %v539_v14 = vmul.f32 %v523_v7, %v1154_v49 }
 0x277   :  { %v550_v5 = vadd.f32 %v534_v58, %v1139_v38  ;;  %v552_v6 = vadd.f32 %v536_v59, %v1142_v39  ;;  %v427_v9 = vpop.f32.mrb[6].mxu0  ;;  %v1177_v10 = vpop.f32.mrb[6].mxu1  ;;  %v1189_v24 = vadd.f32 %v423_v61, %v1124_v22  ;;  %v538_v26 = vmul.f32 %v522_v19, %v1159_v54 }
 0x278   :  { %v565_v11 = vmul.f32 0.7978846, %v549_v63  ;;  %v567_v12 = vmul.f32 0.7978846, %v551_v0  ;;  %v1180_v16 = vpop.f32.mrb[7].mxu0  ;;  %v1184_v20 = vpop.f32.mrb[7].mxu1  ;;  %v553_v21 = vadd.f32 %v537_v13, %v1151_v48  ;;  %v555_v25 = vadd.f32 %v539_v14, %v1154_v49 }
 0x279   :  { %v566_v17 = vmul.f32 0.7978846, %v550_v5  ;;  %v568_v18 = vmul.f32 0.7978846, %v552_v6  ;;  %v1194_v27 = vadd.f32 %v476_v62, %v1126_v29  ;;  %v554_v33 = vadd.f32 %v538_v26, %v1159_v54 }
 0x27a   :  { %821 = vtanh.f32 %v565_v11  ;;  %v569_v15 = vmul.f32 0.7978846, %v553_v21  ;;  %v571_v32 = vmul.f32 0.7978846, %v555_v25  ;;  %v509_v36 = vmul.f32 0.044715, %v1189_v24 }
 0x27b   :  { %823 = vtanh.f32 %v567_v12  ;;  %v485_v37 = vmul.f32 0.5, %v1133_v34  ;;  %v540_v40 = vmul.f32 %v524_v28, %v1171_v2  ;;  %v511_v41 = vmul.f32 0.044715, %v1194_v27 }
 0x27c   :  { %825 = vtanh.f32 %v566_v17  ;;  %v570_v42 = vmul.f32 0.7978846, %v554_v33  ;;  %v525_v43 = vmul.f32 %v509_v36, %v1189_v24  ;;  %v1204_v44 = vadd.f32 %v425_v3, %v1128_v30 }
 0x27d   :  { %827 = vtanh.f32 %v568_v18  ;;  %v556_v45 = vadd.f32 %v540_v40, %v1171_v2  ;;  %v527_v46 = vmul.f32 %v511_v41, %v1194_v27  ;;  %v1209_v47 = vadd.f32 %v478_v4, %v1130_v31 }
 0x27e   :  { %829 = vtanh.f32 %v569_v15  ;;  %v1212_v34 = vadd.f32 %v427_v9, %v1124_v22  ;;  %v487_v50 = vmul.f32 0.5, %v1136_v35  ;;  %v541_v51 = vmul.f32 %v525_v43, %v1189_v24 }
 0x27f   :  { %831 = vtanh.f32 %v571_v32  ;;  %v510_v52 = vmul.f32 0.044715, %v1204_v44  ;;  %v486_v53 = vmul.f32 0.5, %v1139_v38  ;;  %v572_v55 = vmul.f32 0.7978846, %v556_v45 }
 0x280   :  { %833 = vtanh.f32 %v570_v42  ;;  %v543_v56 = vmul.f32 %v527_v46, %v1194_v27  ;;  %v512_v57 = vmul.f32 0.044715, %v1209_v47  ;;  %v488_v58 = vmul.f32 0.5, %v1142_v39 }
 0x281   :  { %v557_v59 = vadd.f32 %v541_v51, %v1189_v24  ;;  %v526_v22 = vmul.f32 %v510_v52, %v1204_v44  ;;  %v513_v35 = vmul.f32 0.044715, %v1212_v34  ;;  %v489_v61 = vmul.f32 0.5, %v1151_v48 }
 0x282   :  { %835 = vtanh.f32 %v572_v55  ;;  %v559_v62 = vadd.f32 %v543_v56, %v1194_v27  ;;  %v528_v38 = vmul.f32 %v512_v57, %v1209_v47  ;;  %v1232_v48 = vadd.f32 %v1177_v10, %v1126_v29 }
 0x283   :  { %v573_v1 = vmul.f32 0.7978846, %v557_v59  ;;  %v542_v3 = vmul.f32 %v526_v22, %v1204_v44  ;;  %v529_v39 = vmul.f32 %v513_v35, %v1212_v34  ;;  %v490_v10 = vmul.f32 0.5, %v1159_v54 }
 0x284   :  { %v822_v60 = vpop.eup %821  ;;  %v575_v6 = vmul.f32 0.7978846, %v559_v62  ;;  %v544_v7 = vmul.f32 %v528_v38, %v1209_v47  ;;  %v515_v28 = vmul.f32 0.044715, %v1232_v48  ;;  %v491_v43 = vmul.f32 0.5, %v1154_v49 }
 0x285   :  { %v824_v63 = vpop.eup %823  ;;  %v597_v0 = vadd.f32 1.0, %v822_v60  ;;  %837 = vtanh.f32 %v573_v1  ;;  %v558_v12 = vadd.f32 %v542_v3, %v1204_v44  ;;  %v545_v26 = vmul.f32 %v529_v39, %v1212_v34 }
 0x286   :  { %v826_v4 = vpop.eup %825  ;;  %v599_v5 = vadd.f32 1.0, %v824_v63  ;;  %839 = vtanh.f32 %v575_v6  ;;  %v560_v14 = vadd.f32 %v544_v7, %v1209_v47  ;;  %v531_v45 = vmul.f32 %v515_v28, %v1232_v48 }
 0x287   :  { %v828_v8 = vpop.eup %827  ;;  %v613_v9 = vmul.f32 %v597_v0, %v485_v37  ;;  %v598_v11 = vadd.f32 1.0, %v826_v4  ;;  %v574_v25 = vmul.f32 0.7978846, %v558_v12  ;;  %v561_v42 = vadd.f32 %v545_v26, %v1212_v34 }
 0x288   :  { %v830_v13 = vpop.eup %829  ;;  %v615_v17 = vmul.f32 %v599_v5, %v487_v50  ;;  %v600_v18 = vadd.f32 1.0, %v828_v8  ;;  %v576_v15 = vmul.f32 0.7978846, %v560_v14  ;;  %v430_v54 = vadd.f32 %v1180_v16, %v1128_v30 }
 0x289   :  { %v832_v19 = vpop.eup %831  ;;  %v614_v21 = vmul.f32 %v598_v11, %v486_v53  ;;  %v601_v23 = vadd.f32 1.0, %v830_v13  ;;  %841 = vtanh.f32 %v574_v25  ;;  %v483_v46 = vadd.f32 %v1184_v20, %v1130_v31 }
 0x28a   :  { %v616_v29 = vmul.f32 %v600_v18, %v488_v58  ;;  %v834_v32 = vpop.eup %833  ;;  %v603_v37 = vadd.f32 1.0, %v832_v19  ;;  %843 = vtanh.f32 %v576_v15  ;;  %v492_v53 = vmul.f32 0.5, %v1171_v2 }
 0x28b   :  { %v746_v33 = vpack.c.bf16 %v614_v21, %v613_v9  ;;  %v617_v36 = vmul.f32 %v601_v23, %v489_v61  ;;  %v602_v41 = vadd.f32 1.0, %v834_v32  ;;  %v547_v56 = vmul.f32 %v531_v45, %v1232_v48 }
 0x28c   :  { %v747_v40 = vpack.c.bf16 %v616_v29, %v615_v17  ;;  %v836_v50 = vpop.eup %835  ;;  %v619_v52 = vmul.f32 %v603_v37, %v491_v43  ;;  %v577_v58 = vmul.f32 0.7978846, %v561_v42  ;;  %v514_v49 = vmul.f32 0.044715, %v430_v54 }
 0x28d   :  { %677 = vst [vmem:[#allocation12] sm:$0xff] %v746_v33  ;;  %v618_v51 = vmul.f32 %v602_v41, %v490_v10  ;;  %v604_v55 = vadd.f32 1.0, %v836_v50  ;;  %v516_v59 = vmul.f32 0.044715, %v483_v46  ;;  %v563_v30 = vadd.f32 %v547_v56, %v1232_v48 }
 0x28e   :  { %678 = vst [vmem:[#allocation12 + $0x8] sm:$0xff] %v747_v40  ;;  %v530_v20 = vmul.f32 %v514_v49, %v430_v54  ;;  %v493_v2 = vmul.f32 0.5, %v1189_v24  ;;  %845 = vtanh.f32 %v577_v58  ;;  %v495_v3 = vmul.f32 0.5, %v1194_v27 }
 0x28f   :  { %v748_v57 = vpack.c.bf16 %v618_v51, %v617_v36  ;;  %v838_v22 = vpop.eup %837  ;;  %v620_v35 = vmul.f32 %v604_v55, %v492_v53  ;;  %v532_v60 = vmul.f32 %v516_v59, %v483_v46  ;;  %v579_v38 = vmul.f32 0.7978846, %v563_v30 }
 0x290   :  { %v840_v16 = vpop.eup %839  ;;  %v605_v31 = vadd.f32 1.0, %v838_v22  ;;  %v546_v63 = vmul.f32 %v530_v20, %v430_v54  ;;  %v494_v39 = vmul.f32 0.5, %v1204_v44  ;;  %v496_v11 = vmul.f32 0.5, %v1209_v47 }
 0x291   :  { %679 = vst [vmem:[#allocation12 + $0x10] sm:$0xff] %v748_v57  ;;  %v749_v61 = vpack.c.bf16 %v620_v35, %v619_v52  ;;  %v607_v62 = vadd.f32 1.0, %v840_v16  ;;  %v548_v0 = vmul.f32 %v532_v60, %v483_v46  ;;  %847 = vtanh.f32 %v579_v38 }
 0x292   :  { %v621_v5 = vmul.f32 %v605_v31, %v493_v2  ;;  %v562_v7 = vadd.f32 %v546_v63, %v430_v54  ;;  %v497_v25 = vmul.f32 0.5, %v1212_v34  ;;  %v499_v47 = vmul.f32 0.5, %v1232_v48 }
 0x293   :  { %v842_v1 = vpop.eup %841  ;;  %680 = vst [vmem:[#allocation12 + $0x18] sm:$0xff] %v749_v61  ;;  %v564_v8 = vadd.f32 %v548_v0, %v483_v46  ;;  %v623_v9 = vmul.f32 %v607_v62, %v495_v3  ;;  %v498_v15 = vmul.f32 0.5, %v430_v54  ;;  %v500_v33 = vmul.f32 0.5, %v483_v46 }
 0x294   :  { %v844_v4 = vpop.eup %843  ;;  %v606_v6 = vadd.f32 1.0, %v842_v1  ;;  %v578_v13 = vmul.f32 0.7978846, %v562_v7 }
 0x295   :  { %v608_v12 = vadd.f32 1.0, %v844_v4  ;;  %v580_v17 = vmul.f32 0.7978846, %v564_v8 }
 0x296   :  { %v622_v24 = vmul.f32 %v606_v6, %v494_v39  ;;  %849 = vtanh.f32 %v578_v13 }
 0x297   :  { %v624_v18 = vmul.f32 %v608_v12, %v496_v11  ;;  %851 = vtanh.f32 %v580_v17 }
 0x298   :  { %v750_v14 = vpack.c.bf16 %v622_v24, %v621_v5  ;;  %v846_v27 = vpop.eup %845 }
 0x299   :  { %v751_v19 = vpack.c.bf16 %v624_v18, %v623_v9  ;;  %v609_v21 = vadd.f32 1.0, %v846_v27 }
 0x29a   :  { %681 = vst [vmem:[#allocation12 + $0x20] sm:$0xff] %v750_v14 }
 0x29b   :  { %682 = vst [vmem:[#allocation12 + $0x28] sm:$0xff] %v751_v19  ;;  %v848_v44 = vpop.eup %847  ;;  %v625_v10 = vmul.f32 %v609_v21, %v497_v25 }
 0x29c   :  { %v611_v23 = vadd.f32 1.0, %v848_v44 }
 0x29e   :  { %v627_v32 = vmul.f32 %v611_v23, %v499_v47 }
 0x2a0   :  { %v850_v26 = vpop.eup %849 }
 0x2a1   :  { %v852_v29 = vpop.eup %851  ;;  %v610_v28 = vadd.f32 1.0, %v850_v26 }
 0x2a2   :  { %v612_v36 = vadd.f32 1.0, %v852_v29 }
 0x2a3   :  { %v626_v37 = vmul.f32 %v610_v28, %v498_v15 }
 0x2a4   :  { %v628_v40 = vmul.f32 %v612_v36, %v500_v33 }
 0x2a5   :  { %v752_v41 = vpack.c.bf16 %v626_v37, %v625_v10 }
 0x2a6   :  { %v753_v42 = vpack.c.bf16 %v628_v40, %v627_v32 }
 0x2a7   :  { %683 = vst [vmem:[#allocation12 + $0x30] sm:$0xff] %v752_v41 }
 0x2a8   :  { %684 = vst [vmem:[#allocation12 + $0x38] sm:$0xff] %v753_v42 }
 0x2a9   :  { %974 = shalt.err (!%p971_p2)
}
 0x2aa   :  { %s975_s9 = scalar_lea.hbm %s1275_s5, 1024 }
 0x2ab   :  { %p976_p3 = scmp.ne.s32.totalorder %s1275_s5, %s975_s9  ;;  %p979_p4 = scmp.lt.u32.totalorder %s975_s9, %s1275_s5 }
 0x2ad   :  { %p981_p5 = pnand %p979_p4, %p976_p3 }
 0x2af   :  { %984 = shalt.err (!%p981_p5)
}
 0x2b0   :  { %696 = dma.vmem_to_hbm [thread:$0]  %s691_s30, 1024, %s1275_s5, [#allocation5], %s995_s1, %s995_s1, %s996_s16  }
 0x2b1   :  { %991 = dma.done.wait [#allocation5], 1024  }
 0x2b2   :  { %992 = vsyncadd [#allocation5], 4294966272 }
 0x2b3   :  { %700 = vsyncpa [#allocation4], 1 }
 0x2b4   :  { %701 = vsyncpa [#allocation7], 1 }
 0x2b5   :  { %702 = vsyncpa [#allocation10], 1 }
 0x2b6   :  { %703 = vsyncpa [#allocation5], 1 }

// kernel: encoder_block_forward.7
= control target key start
LH: loop header
LB: loop body
LE: loop exit
PB: predicated region body
PF: predicated region fallthrough
CT: control target
= control target key end

     0   :  { %9 = vsyncpa [#allocation4], 0  ;;  %s922_s0 = inlined_call_operand.hbm [shape: bf16[32,512], index: 0, kind: input, shape index: {}]   ;;  %s923_s1 = inlined_call_operand.hbm [shape: bf16[512,128], index: 1, kind: input, shape index: {}]   ;;  %s924_s2 = inlined_call_operand.hbm [shape: f32[1,128], index: 2, kind: input, shape index: {}]   ;;  %s925_s3 = inlined_call_operand.hbm [shape: f32[32,128], index: 3, kind: input, shape index: {}]   ;;  %s926_s4 = inlined_call_operand.hbm [shape: f32[32,128], index: 4, kind: output, shape index: {}]  }
   0x1   :  { %10 = vsyncpa [#allocation7], 0 }
   0x2   :  { %11 = vsyncpa [#allocation10], 0 }
   0x3   :  { %12 = vsyncpa [#allocation5], 0  ;;  %s813_s15 = smov [#allocation6]   ;;  %s695_s19 = scalar_lea.hbm %s923_s1, 4096 }
   0x4   :  { %s30_s16 = sshll.u32 %s813_s15, 4  ;;  %p696_p0 = scmp.ne.s32.totalorder %s923_s1, %s695_s19  ;;  %s31_s16 = int_to_ptr.vmem [resolvable:$true] %s30_s16 }
   0x5   :  { %p699_p1 = scmp.lt.u32.totalorder %s695_s19, %s923_s1 }
   0x7   :  { %p701_p2 = pnand %p699_p1, %p696_p0 }
   0x9   :  { %704 = shalt.err (!%p701_p2)
}
   0xa   :  { %s705_s24 = scalar_lea.vmem %s31_s16, 4096  ;;  %p710_p4 = scmp.lt.s32.totalorder %s31_s16, %s31_s16 }
   0xb   :  { %p706_p3 = scmp.ne.s32.totalorder %s31_s16, %s705_s24  ;;  %p711_p5 = scmp.lt.s32.totalorder %s705_s24, %s705_s24 }
   0xd   :  { %p712_p6 = por %p711_p5, %p710_p4 }
   0xf   :  { %p713_p7 = pnand %p712_p6, %p706_p3 }
  0x11   :  { %716 = shalt.err (!%p713_p7)
}
  0x12   :  { %s814_s25 = smov 64   ;;  %s815_s26 = smov 4  }
  0x13   :  { %36 = dma.hbm_to_vmem [thread:$0]  %s923_s1, 4096, %s31_s16, [#allocation7], %s814_s25, %s814_s25, %s815_s26  }
  0x14   :  { %s816_s29 = smov [#allocation3]   ;;  %s717_s7 = scalar_lea.hbm %s922_s0, 1024 }
  0x15   :  { %s18_s30 = sshll.u32 %s816_s29, 4  ;;  %p718_p8 = scmp.ne.s32.totalorder %s922_s0, %s717_s7  ;;  %s19_s30 = int_to_ptr.vmem [resolvable:$true] %s18_s30 }
  0x16   :  { %p721_p9 = scmp.lt.u32.totalorder %s717_s7, %s922_s0 }
  0x18   :  { %p723_p10 = pnand %p721_p9, %p718_p8 }
  0x1a   :  { %726 = shalt.err (!%p723_p10)
}
  0x1b   :  { %s727_s12 = scalar_lea.vmem %s19_s30, 1024  ;;  %p732_p12 = scmp.lt.s32.totalorder %s19_s30, %s19_s30 }
  0x1c   :  { %p728_p11 = scmp.ne.s32.totalorder %s19_s30, %s727_s12  ;;  %p733_p13 = scmp.lt.s32.totalorder %s727_s12, %s727_s12 }
  0x1e   :  { %p734_p0 = por %p733_p13, %p732_p12 }
  0x20   :  { %p735_p1 = pnand %p734_p0, %p728_p11 }
  0x22   :  { %738 = shalt.err (!%p735_p1)
}
  0x23   :  { %s817_s1 = smov 256   ;;  %s818_s13 = smov 16  }
  0x24   :  { %24 = dma.hbm_to_vmem [thread:$0]  %s922_s0, 1024, %s19_s30, [#allocation4], %s817_s1, %s817_s1, %s818_s13  }
  0x25   :  { %s819_s16 = smov [#allocation8]   ;;  %s820_s18 = smov [#allocation9]  }
  0x26   :  { %s43_s17 = sshll.u32 %s819_s16, 4  ;;  %s52_s19 = sshll.u32 %s820_s18, 4  ;;  %s44_s17 = int_to_ptr.vmem [resolvable:$true] %s43_s17  ;;  %s873_s19 = int_to_ptr.vmem [resolvable:$true] %s52_s19 }
  0x27   :  { %s739_s22 = scalar_lea.hbm %s924_s2, 16 }
  0x28   :  { %p740_p2 = scmp.ne.s32.totalorder %s924_s2, %s739_s22  ;;  %p743_p3 = scmp.lt.u32.totalorder %s739_s22, %s924_s2 }
  0x2a   :  { %p745_p4 = pnand %p743_p3, %p740_p2 }
  0x2c   :  { %748 = shalt.err (!%p745_p4)
}
  0x2d   :  { %s749_s0 = scalar_lea.vmem %s44_s17, 16  ;;  %s753_s27 = scalar_lea.vmem %s44_s17, 32 }
  0x2e   :  { %p750_p5 = scmp.ne.s32.totalorder %s44_s17, %s749_s0  ;;  %p754_p6 = scmp.lt.s32.totalorder %s44_s17, %s44_s17 }
  0x2f   :  { %p755_p7 = scmp.lt.s32.totalorder %s753_s27, %s749_s0 }
  0x31   :  { %p756_p8 = por %p755_p7, %p754_p6 }
  0x33   :  { %p757_p9 = pnand %p756_p8, %p750_p5 }
  0x35   :  { %760 = shalt.err (!%p757_p9)
}
  0x36   :  { %46 = dma.hbm_to_vmem [thread:$0]  %s924_s2, 16, %s44_s17, [#allocation7]  }
  0x37   :  { %s761_s6 = scalar_lea.hbm %s925_s3, 512 }
  0x38   :  { %p762_p10 = scmp.ne.s32.totalorder %s925_s3, %s761_s6  ;;  %p765_p11 = scmp.lt.u32.totalorder %s761_s6, %s925_s3 }
  0x3a   :  { %p767_p12 = pnand %p765_p11, %p762_p10 }
  0x3c   :  { %770 = shalt.err (!%p767_p12)
}
  0x3d   :  { %s771_s11 = scalar_lea.vmem %s873_s19, 512  ;;  %p776_p0 = scmp.lt.s32.totalorder %s873_s19, %s873_s19 }
  0x3e   :  { %p772_p13 = scmp.ne.s32.totalorder %s873_s19, %s771_s11  ;;  %p777_p1 = scmp.lt.s32.totalorder %s771_s11, %s771_s11 }
  0x40   :  { %p778_p2 = por %p777_p1, %p776_p0 }
  0x42   :  { %p779_p3 = pnand %p778_p2, %p772_p13 }
  0x44   :  { %782 = shalt.err (!%p779_p3)
}
  0x45   :  { %s821_s2 = smov 128   ;;  %s822_s12 = smov 8  }
  0x46   :  { %58 = dma.hbm_to_vmem [thread:$0]  %s925_s3, 512, %s873_s19, [#allocation10], %s821_s2, %s821_s2, %s822_s12  }
  0x47   :  { %805 = dma.done.wait [#allocation4], 1024  }
  0x48   :  { %806 = vsyncadd [#allocation4], 4294966272 }
  0x49   :  { %807 = dma.done.wait [#allocation7], 4112  }
  0x4a   :  { %808 = vsyncadd [#allocation7], 4294963184 }
  0x4b   :  { %809 = dma.done.wait [#allocation10], 512  }
  0x4c   :  { %810 = vsyncadd [#allocation10], 4294966784  ;;  %v651_v0 = vld [vmem:[#allocation6 + $0x40] sm:$0xff]   ;;  %v655_v4 = vld [vmem:[#allocation6 + $0x48] sm:$0xff]   ;;  %s823_s3 = smov [#allocation11]  }
  0x4d   :  { %v652_v1 = vld [vmem:[#allocation6 + $0xc0] sm:$0xff]   ;;  %584 = vmatprep.subr.bf16.mxu0 %v651_v0  ;;  %v656_v5 = vld [vmem:[#allocation6 + $0xc8] sm:$0xff]   ;;  %v659_v8 = vld [vmem:[#allocation6 + $0x50] sm:$0xff]   ;;  %s529_s14 = sshll.u32 %s823_s3, 4  ;;  %s530_s14 = int_to_ptr.vmem [resolvable:$true] %s529_s14 }
  0x4e   :  { %v653_v2 = vld [vmem:[#allocation6] sm:$0xff]   ;;  %612 = vmatprep.subr.bf16.mxu1 %v652_v1  ;;  %v657_v6 = vld [vmem:[#allocation6 + $0x8] sm:$0xff]   ;;  %v660_v9 = vld [vmem:[#allocation6 + $0xd0] sm:$0xff]   ;;  %s783_s15 = scalar_lea.vmem %s530_s14, 512  ;;  %p788_p5 = scmp.lt.s32.totalorder %s530_s14, %s530_s14 }
  0x4f   :  { %v654_v3 = vld [vmem:[#allocation6 + $0x80] sm:$0xff]   ;;  %585 = vmatpush3.bf16.msra.mxu0 %v653_v2  ;;  %v658_v7 = vld [vmem:[#allocation6 + $0x88] sm:$0xff]   ;;  %v661_v10 = vld [vmem:[#allocation6 + $0x10] sm:$0xff]   ;;  %p784_p4 = scmp.ne.s32.totalorder %s530_s14, %s783_s15  ;;  %p789_p6 = scmp.lt.s32.totalorder %s783_s15, %s783_s15 }
  0x50   :  { %613 = vmatpush3.bf16.msra.mxu1 %v654_v3  ;;  %586 = vmatprep.subr.bf16.mxu0 %v655_v4  ;;  %v662_v11 = vld [vmem:[#allocation6 + $0x90] sm:$0xff]   ;;  %v663_v12 = vld [vmem:[#allocation6 + $0x58] sm:$0xff]   ;;  %v667_v16 = vld [vmem:[#allocation6 + $0x60] sm:$0xff]  }
  0x51   :  { %614 = vmatprep.subr.bf16.mxu1 %v656_v5  ;;  %v664_v13 = vld [vmem:[#allocation6 + $0xd8] sm:$0xff]   ;;  %v668_v17 = vld [vmem:[#allocation6 + $0xe0] sm:$0xff]   ;;  %v671_v20 = vld [vmem:[#allocation6 + $0x68] sm:$0xff]   ;;  %p790_p7 = por %p789_p6, %p788_p5 }
  0x52   :  { %v665_v14 = vld [vmem:[#allocation6 + $0x18] sm:$0xff]   ;;  %v669_v18 = vld [vmem:[#allocation6 + $0x20] sm:$0xff]   ;;  %v672_v21 = vld [vmem:[#allocation6 + $0xe8] sm:$0xff]  }
  0x53   :  { %587 = vmatpush3.bf16.msra.mxu0 %v657_v6  ;;  %v666_v15 = vld [vmem:[#allocation6 + $0x98] sm:$0xff]   ;;  %v670_v19 = vld [vmem:[#allocation6 + $0xa0] sm:$0xff]   ;;  %v673_v22 = vld [vmem:[#allocation6 + $0x28] sm:$0xff]   ;;  %p791_p8 = pnand %p790_p7, %p784_p4 }
  0x54   :  { %615 = vmatpush3.bf16.msra.mxu1 %v658_v7  ;;  %588 = vmatprep.subr.bf16.mxu0 %v659_v8  ;;  %v674_v23 = vld [vmem:[#allocation6 + $0xa8] sm:$0xff]   ;;  %v675_v24 = vld [vmem:[#allocation6 + $0x70] sm:$0xff]   ;;  %v679_v28 = vld [vmem:[#allocation6 + $0x78] sm:$0xff]  }
  0x55   :  { %616 = vmatprep.subr.bf16.mxu1 %v660_v9  ;;  %v676_v25 = vld [vmem:[#allocation6 + $0xf0] sm:$0xff]   ;;  %v680_v29 = vld [vmem:[#allocation6 + $0xf8] sm:$0xff]   ;;  %v583_v49 = vld [vmem:[#allocation8] ss:$0 sm:$0xff] }
  0x56   :  { %v677_v26 = vld [vmem:[#allocation6 + $0x30] sm:$0xff]   ;;  %v681_v30 = vld [vmem:[#allocation6 + $0x38] sm:$0xff]   ;;  %v512_v54 = vld [vmem:[#allocation9] sm:$0xff] }
  0x57   :  { %589 = vmatpush3.bf16.msra.mxu0 %v661_v10  ;;  %v678_v27 = vld [vmem:[#allocation6 + $0xb0] sm:$0xff]   ;;  %v682_v31 = vld [vmem:[#allocation6 + $0xb8] sm:$0xff]  }
  0x58   :  { %617 = vmatpush3.bf16.msra.mxu1 %v662_v11  ;;  %590 = vmatprep.subr.bf16.mxu0 %v663_v12  ;;  %v683_v32 = vld [vmem:[#allocation3] ss:$16 sps:$4 sm:$0xff]   ;;  %v685_v33 = vld [vmem:[#allocation3 + $0x4] ss:$16 sps:$4 sm:$0xff]   ;;  %v686_v34 = vld [vmem:[#allocation3 + $0x8] ss:$16 sps:$4 sm:$0xff]  }
  0x59   :  { %618 = vmatprep.subr.bf16.mxu1 %v664_v13  ;;  %v688_v35 = vld [vmem:[#allocation3 + $0xc] ss:$16 sps:$4 sm:$0xff]   ;;  %420 = vmatprep.mubr.bf16.mxu0 %v685_v33  ;;  %v689_v36 = vld [vmem:[#allocation3 + $0x24] ss:$16 sps:$4 sm:$0xff]   ;;  %v693_v38 = vld [vmem:[#allocation3 + $0x20] ss:$16 sps:$4 sm:$0xff]  }
  0x5a   :  { %469 = vmatprep.mubr.bf16.mxu1 %v688_v35  ;;  %v691_v37 = vld [vmem:[#allocation3 + $0x2c] ss:$16 sps:$4 sm:$0xff]   ;;  %v694_v39 = vld [vmem:[#allocation3 + $0x28] ss:$16 sps:$4 sm:$0xff]  }
  0x5b   :  { %591 = vmatpush3.bf16.msra.mxu0 %v665_v14  ;;  %v513_v57 = vld [vmem:[#allocation9 + $0x8] sm:$0xff]  ;;  %v514_v10 = vld [vmem:[#allocation9 + $0x10] sm:$0xff]  ;;  %v515_v13 = vld [vmem:[#allocation9 + $0x18] sm:$0xff] }
  0x5c   :  { %619 = vmatpush3.bf16.msra.mxu1 %v666_v15  ;;  %592 = vmatprep.subr.bf16.mxu0 %v667_v16 }
  0x5d   :  { %620 = vmatprep.subr.bf16.mxu1 %v668_v17 }
  0x5f   :  { %593 = vmatpush3.bf16.msra.mxu0 %v669_v18 }
  0x60   :  { %621 = vmatpush3.bf16.msra.mxu1 %v670_v19  ;;  %594 = vmatprep.subr.bf16.mxu0 %v671_v20 }
  0x61   :  { %622 = vmatprep.subr.bf16.mxu1 %v672_v21 }
  0x63   :  { %595 = vmatpush3.bf16.msra.mxu0 %v673_v22 }
  0x64   :  { %623 = vmatpush3.bf16.msra.mxu1 %v674_v23  ;;  %596 = vmatprep.subr.bf16.mxu0 %v675_v24 }
  0x65   :  { %624 = vmatprep.subr.bf16.mxu1 %v676_v25 }
  0x67   :  { %597 = vmatpush3.bf16.msra.mxu0 %v677_v26 }
  0x68   :  { %625 = vmatpush3.bf16.msra.mxu1 %v678_v27  ;;  %598 = vmatprep.subr.bf16.mxu0 %v679_v28 }
  0x69   :  { %626 = vmatprep.subr.bf16.mxu1 %v680_v29 }
  0x6b   :  { %599 = vmatpush3.bf16.msra.mxu0 %v681_v30 }
  0x6c   :  { %627 = vmatpush3.bf16.msra.mxu1 %v682_v31 }
  0x6e   :  { %421 = vmatmul.mubr.bf16.vlgmr.msra.gmra.mrb[0].mxu0 %v683_v32 }
  0x6f   :  { %470 = vmatmul.mubr.bf16.vlgmr.msra.gmra.mrb[0].mxu1 %v686_v34  ;;  %428 = vmatprep.mubr.bf16.mxu0 %v689_v36 }
  0x70   :  { %477 = vmatprep.mubr.bf16.mxu1 %v691_v37 }
  0x76   :  { %429 = vmatmul.mubr.bf16.gmra.mrb[4].mxu0 %v693_v38 }
  0x77   :  { %478 = vmatmul.mubr.bf16.gmra.mrb[4].mxu1 %v694_v39 }
 0x141   :  { %v600_v40 = vpop.f32.mrb[0].mxu0 }
 0x142   :  { %v628_v41 = vpop.f32.mrb[0].mxu1  ;;  %v601_v42 = vpop.f32.mrb[1].mxu0 }
 0x143   :  { %v602_v43 = vadd.f32 %v601_v42, %v600_v40  ;;  %v629_v44 = vpop.f32.mrb[1].mxu1  ;;  %v603_v45 = vpop.f32.mrb[2].mxu0 }
 0x144   :  { %v630_v46 = vadd.f32 %v629_v44, %v628_v41  ;;  %v631_v47 = vpop.f32.mrb[2].mxu1  ;;  %v604_v48 = vpop.f32.mrb[3].mxu0 }
 0x145   :  { %v605_v50 = vadd.f32 %v604_v48, %v603_v45  ;;  %v632_v51 = vpop.f32.mrb[3].mxu1 }
 0x146   :  { %v472_v52 = vadd.f32 %v630_v46, %v602_v43  ;;  %v633_v53 = vadd.f32 %v632_v51, %v631_v47 }
 0x148   :  { %v508_v55 = vadd.f32 %v583_v49, %v472_v52  ;;  %v475_v56 = vadd.f32 %v633_v53, %v605_v50 }
 0x149   :  { %v606_v58 = vpop.f32.mrb[4].mxu0 }
 0x14a   :  { %v516_v59 = vadd.f32 %v512_v54, %v508_v55  ;;  %v509_v60 = vadd.f32 %v583_v49, %v475_v56  ;;  %v634_v61 = vpop.f32.mrb[4].mxu1  ;;  %v607_v62 = vpop.f32.mrb[5].mxu0 }
 0x14b   :  { %v608_v63 = vadd.f32 %v607_v62, %v606_v58  ;;  %v635_v0 = vpop.f32.mrb[5].mxu1  ;;  %v609_v1 = vpop.f32.mrb[6].mxu0 }
 0x14c   :  { %520 = vst [vmem:[#allocation11] sm:$0xff] %v516_v59  ;;  %v517_v2 = vadd.f32 %v513_v57, %v509_v60  ;;  %v636_v3 = vadd.f32 %v635_v0, %v634_v61  ;;  %v637_v4 = vpop.f32.mrb[6].mxu1  ;;  %v610_v5 = vpop.f32.mrb[7].mxu0 }
 0x14d   :  { %v611_v6 = vadd.f32 %v610_v5, %v609_v1  ;;  %v638_v7 = vpop.f32.mrb[7].mxu1 }
 0x14e   :  { %521 = vst [vmem:[#allocation11 + $0x8] sm:$0xff] %v517_v2  ;;  %v480_v8 = vadd.f32 %v636_v3, %v608_v63  ;;  %v639_v9 = vadd.f32 %v638_v7, %v637_v4 }
 0x150   :  { %v510_v11 = vadd.f32 %v583_v49, %v480_v8  ;;  %v483_v12 = vadd.f32 %v639_v9, %v611_v6 }
 0x152   :  { %v518_v14 = vadd.f32 %v514_v10, %v510_v11  ;;  %v511_v15 = vadd.f32 %v583_v49, %v483_v12 }
 0x154   :  { %522 = vst [vmem:[#allocation11 + $0x10] sm:$0xff] %v518_v14  ;;  %v519_v16 = vadd.f32 %v515_v13, %v511_v15 }
 0x156   :  { %523 = vst [vmem:[#allocation11 + $0x18] sm:$0xff] %v519_v16 }
 0x157   :  { %794 = shalt.err (!%p791_p8)
}
 0x158   :  { %s795_s18 = scalar_lea.hbm %s926_s4, 512 }
 0x159   :  { %p796_p9 = scmp.ne.s32.totalorder %s926_s4, %s795_s18  ;;  %p799_p10 = scmp.lt.u32.totalorder %s795_s18, %s926_s4 }
 0x15b   :  { %p801_p11 = pnand %p799_p10, %p796_p9 }
 0x15d   :  { %804 = shalt.err (!%p801_p11)
}
 0x15e   :  { %535 = dma.vmem_to_hbm [thread:$0]  %s530_s14, 512, %s926_s4, [#allocation5], %s821_s2, %s821_s2, %s822_s12  }
 0x15f   :  { %811 = dma.done.wait [#allocation5], 512  }
 0x160   :  { %812 = vsyncadd [#allocation5], 4294966784 }
 0x161   :  { %539 = vsyncpa [#allocation4], 1 }
 0x162   :  { %540 = vsyncpa [#allocation7], 1 }
 0x163   :  { %541 = vsyncpa [#allocation10], 1 }
 0x164   :  { %542 = vsyncpa [#allocation5], 1 }

</bundles_post_ra>
